<compile_context>
chip_gen: v6e
topology: v6e:2x2x1
jax: 0.10.0
libtpu: 0.0.40
codegen_flags: <defaults>
</compile_context>

<pallas_src>
import functools
import math

import jax
import jax.numpy as jnp
from jax.experimental import pallas as pl
from jax.experimental.pallas import tpu as pltpu


def _layernorm_f32(v, w, b, eps=1e-5):
    v = v.astype(jnp.float32)
    mu = jnp.mean(v, axis=-1, keepdims=True)
    var = jnp.mean(jnp.square(v - mu), axis=-1, keepdims=True)
    return (v - mu) * jax.lax.rsqrt(var + eps) * w + b


def transformer_kernel(x_ref,
                       ln1_w_ref, ln1_b_ref,
                       wq_ref, bq_ref, wk_ref, bk_ref, wv_ref, bv_ref,
                       wo_ref, bo_ref,
                       ln2_w_ref, ln2_b_ref,
                       wfc_ref, bfc_ref, wproj_ref, bproj_ref,
                       o_ref,
                       *scratch,
                       n_head: int, mlp_chunk_l: int, valid_len: int,
                       acc_in_out: bool):
    if acc_in_out:
        (ctx_ref,) = scratch
        acc_ref = o_ref          # f32 output block doubles as the resident residual stream
    else:
        acc_ref, ctx_ref = scratch

    layer = pl.program_id(1)

    # Load the residual stream at the first layer of this batch tile; it stays
    # resident in VMEM across the whole layer axis.
    @pl.when(layer == 0)
    def _():
        acc_ref[...] = x_ref[...].astype(acc_ref.dtype)

    x3 = acc_ref[...].astype(jnp.float32)            # (bn, L, D)
    bn, L, D = x3.shape
    M = bn * L
    Dh = D // n_head
    x2 = x3.reshape(M, D)

    # ---- attention branch: LN1 (f32) -> split Q/K/V proj -> per-head softmax
    #      attention -> out proj.  Matmul inputs bf16, f32 accumulation.
    h = _layernorm_f32(x2, ln1_w_ref[...], ln1_b_ref[...])
    hb = h.astype(jnp.bfloat16)
    # 1/sqrt(Dh) is pre-folded into wq/bq; bias-add fused with the bf16 cast so
    # no (M, 3D) f32 intermediate is ever materialized.
    q = (jnp.dot(hb, wq_ref[...], preferred_element_type=jnp.float32)
         + bq_ref[...]).astype(jnp.bfloat16).reshape(bn, L, D)
    k = (jnp.dot(hb, wk_ref[...], preferred_element_type=jnp.float32)
         + bk_ref[...]).astype(jnp.bfloat16).reshape(bn, L, D)
    v = (jnp.dot(hb, wv_ref[...], preferred_element_type=jnp.float32)
         + bv_ref[...]).astype(jnp.bfloat16).reshape(bn, L, D)

    if L > valid_len:                                 # mask padded key positions
        kidx = jax.lax.broadcasted_iota(jnp.int32, (1, 1, L), 2)
        key_bias = jnp.where(kidx >= valid_len, jnp.float32(-1e30), jnp.float32(0.0))
    else:
        key_bias = None

    # Per-head attention, each head written straight into a bf16 VMEM scratch.
    # TODO(synk): at D>=768 process heads in 128-lane-aligned pairs via fori_loop.
    for hi in range(n_head):
        sl = slice(hi * Dh, (hi + 1) * Dh)
        s = jnp.einsum('bqd,bkd->bqk', q[..., sl], k[..., sl],
                       preferred_element_type=jnp.float32)        # (bn, L, L)
        if key_bias is not None:
            s = s + key_bias
        s = s - jnp.max(s, axis=-1, keepdims=True)
        p = jnp.exp(s)
        p = p * pl.reciprocal(jnp.sum(p, axis=-1, keepdims=True), approx=True)
        ctx_h = jnp.einsum('bqk,bkd->bqd', p.astype(jnp.bfloat16), v[..., sl],
                           preferred_element_type=jnp.float32)
        ctx_ref[:, :, sl] = ctx_h.astype(jnp.bfloat16)

    ctx = ctx_ref[...].reshape(M, D)
    attn = jnp.dot(ctx, wo_ref[...], preferred_element_type=jnp.float32) + bo_ref[...]
    acc_ref[...] = (x2 + attn).reshape(bn, L, D).astype(acc_ref.dtype)

    # ---- MLP branch, chunked over rows: LN2 -> c_fc -> QuickGELU -> c_proj.
    # Bounds the (rows, 4D) f32 hidden activation to one chunk at a time.
    n_chunks = L // mlp_chunk_l

    def mlp_body(c, carry):
        start = pl.multiple_of(c * mlp_chunk_l, mlp_chunk_l)
        xr = acc_ref[:, pl.ds(start, mlp_chunk_l), :].astype(jnp.float32)
        xr2 = xr.reshape(bn * mlp_chunk_l, D)
        h2 = _layernorm_f32(xr2, ln2_w_ref[...], ln2_b_ref[...]).astype(jnp.bfloat16)
        f = jnp.dot(h2, wfc_ref[...], preferred_element_type=jnp.float32) + bfc_ref[...]
        f = (f * jax.nn.sigmoid(1.702 * f)).astype(jnp.bfloat16)   # QuickGELU
        y = jnp.dot(f, wproj_ref[...], preferred_element_type=jnp.float32) + bproj_ref[...]
        acc_ref[:, pl.ds(start, mlp_chunk_l), :] = (
            xr + y.reshape(bn, mlp_chunk_l, D)).astype(acc_ref.dtype)
        return carry

    jax.lax.fori_loop(0, n_chunks, mlp_body, 0)

    if not acc_in_out:
        @pl.when(layer == pl.num_programs(1) - 1)
        def _():
            o_ref[...] = acc_ref[...].astype(o_ref.dtype)


def transformer_forward(x_lnd, params, n_head, *, batch_tile=4):
    """CLIP Transformer forward.  x_lnd: (L, N, D) like PyTorch; returns (L, N, D)."""
    L, N, D = x_lnd.shape
    num_layers = params['wq'].shape[0]

    # (L, N, D) -> (N, L, D); pad seq to a multiple of 8 so in-kernel reshapes
    # across the sublane axis are layout no-ops.
    Lp = ((L + 7) // 8) * 8
    x_nld = jnp.transpose(x_lnd, (1, 0, 2))
    if Lp != L:
        x_nld = jnp.pad(x_nld, ((0, 0), (0, Lp - L), (0, 0)))

    # Batch tile: small (VMEM), and >=2 grid steps on the parallel batch axis
    # whenever possible (v7x megacore sharding).
    bn = max(1, min(batch_tile, N))
    while N % bn:
        bn -= 1
    if N >= 2 and N // bn < 2:
        bn = N // 2
        while N % bn:
            bn -= 1
    grid = (N // bn, num_layers)

    # MLP row chunk: multiple of 8, divides Lp, ~256 rows per chunk.
    cl = min(Lp, max(8, ((256 // bn) // 8) * 8))
    while Lp % cl:
        cl -= 8

    acc_in_out = (x_nld.dtype == jnp.float32)

    weight_order = ('ln1_w', 'ln1_b', 'wq', 'bq', 'wk', 'bk', 'wv', 'bv',
                    'wo', 'bo', 'ln2_w', 'ln2_b', 'wfc', 'bfc', 'wproj', 'bproj')
    weight_args = [params[kk] for kk in weight_order]

    def x_map(b, l):
        return (b, 0, 0)

    def w_map(b, l):
        return (l, 0, 0)

    def wspec(a):
        # Whole per-layer weight as one block; layer dim squeezed and indexed by
        # the inner grid axis -> layer l+1 weights DMA while layer l computes.
        return pl.BlockSpec((None,) + a.shape[1:], w_map)

    scratch_shapes = []
    if not acc_in_out:
        scratch_shapes.append(pltpu.VMEM((bn, Lp, D), jnp.float32))   # f32 residual
    scratch_shapes.append(pltpu.VMEM((bn, Lp, D), jnp.bfloat16))      # per-head ctx

    # Explicit VMEM budget: double-buffered weights + I/O blocks + scratch +
    # live intermediates, clamped to the chip's physical VMEM.
    w_block = sum(math.prod(a.shape[1:]) * a.dtype.itemsize for a in weight_args)
    io_block = bn * Lp * D * x_nld.dtype.itemsize
    scratch_b = bn * Lp * D * (2 + (0 if acc_in_out else 4))
    live = bn * Lp * D * (4 * 4 + 2 * 3) + bn * cl * (4 * D) * (4 + 2)
    est = 2 * w_block + 4 * io_block + scratch_b + live
    try:
        phys = int(pltpu.get_tpu_info().vmem_capacity_bytes)
        if phys <= 0:
            phys = 128 << 20
    except Exception:
        phys = 128 << 20
    vmem_limit = int(min(phys, max(32 << 20, int(est * 1.25))))

    out = pl.pallas_call(
        functools.partial(transformer_kernel, n_head=n_head, mlp_chunk_l=cl,
                          valid_len=L, acc_in_out=acc_in_out),
        out_shape=jax.ShapeDtypeStruct((N, Lp, D), x_nld.dtype),
        grid=grid,
        in_specs=[pl.BlockSpec((bn, Lp, D), x_map)] + [wspec(w) for w in weight_args],
        out_specs=pl.BlockSpec((bn, Lp, D), x_map),
        scratch_shapes=scratch_shapes,
        compiler_params=pltpu.CompilerParams(
            dimension_semantics=("parallel", "arbitrary"),
            vmem_limit_bytes=vmem_limit),
    )(x_nld, *weight_args)

    out = out[:, :L, :]
    return jnp.transpose(out, (1, 0, 2))              # back to (L, N, D)


def init_params(key, width, layers, n_head):
    """Stacked synthetic params (leading LAYERS axis); matmul weights in bf16.
    The 1/sqrt(Dh) attention scale is folded into the Q projection at init."""
    D = width
    Dh = D // n_head
    scale = 1.0 / math.sqrt(Dh)
    std = 0.02

    def one_layer(k):
        ks = jax.random.split(k, 8)
        wq = jax.random.normal(ks[0], (D, D), jnp.float32) * std
        wk = jax.random.normal(ks[1], (D, D), jnp.float32) * std
        wv = jax.random.normal(ks[2], (D, D), jnp.float32) * std
        wo = jax.random.normal(ks[3], (D, D), jnp.float32) * std
        wfc = jax.random.normal(ks[4], (D, 4 * D), jnp.float32) * std
        wproj = jax.random.normal(ks[5], (4 * D, D), jnp.float32) * std
        bq = jax.random.normal(ks[6], (1, D), jnp.float32) * std
        bfc = jax.random.normal(ks[7], (1, 4 * D), jnp.float32) * std
        return {
            'ln1_w': jnp.ones((1, D), jnp.float32),
            'ln1_b': jnp.zeros((1, D), jnp.float32),
            'wq': (wq * scale).astype(jnp.bfloat16),
            'bq': bq * scale,
            'wk': wk.astype(jnp.bfloat16),
            'bk': jnp.zeros((1, D), jnp.float32),
            'wv': wv.astype(jnp.bfloat16),
            'bv': jnp.zeros((1, D), jnp.float32),
            'wo': wo.astype(jnp.bfloat16),
            'bo': jnp.zeros((1, D), jnp.float32),
            'ln2_w': jnp.ones((1, D), jnp.float32),
            'ln2_b': jnp.zeros((1, D), jnp.float32),
            'wfc': wfc.astype(jnp.bfloat16),
            'bfc': bfc,
            'wproj': wproj.astype(jnp.bfloat16),
            'bproj': jnp.zeros((1, D), jnp.float32),
        }

    per_layer = [one_layer(k) for k in jax.random.split(key, layers)]
    return {kk: jnp.stack([p[kk] for p in per_layer], axis=0) for kk in per_layer[0]}


def ref_forward(x_lnd, params, n_head):
    """Pure-JAX f32 reference (same bf16 weights, upcast; scale already folded)."""
    x = jnp.transpose(x_lnd, (1, 0, 2)).astype(jnp.float32)   # (N, L, D)
    N, L, D = x.shape
    Dh = D // n_head
    for l in range(params['wq'].shape[0]):
        h = _layernorm_f32(x, params['ln1_w'][l], params['ln1_b'][l])
        q = h @ params['wq'][l].astype(jnp.float32) + params['bq'][l]
        k = h @ params['wk'][l].astype(jnp.float32) + params['bk'][l]
        v = h @ params['wv'][l].astype(jnp.float32) + params['bv'][l]
        q = q.reshape(N, L, n_head, Dh)
        k = k.reshape(N, L, n_head, Dh)
        v = v.reshape(N, L, n_head, Dh)
        s = jnp.einsum('nqhd,nkhd->nhqk', q, k)
        p = jax.nn.softmax(s, axis=-1)
        ctx = jnp.einsum('nhqk,nkhd->nqhd', p, v).reshape(N, L, D)
        x = x + ctx @ params['wo'][l].astype(jnp.float32) + params['bo'][l]
        h2 = _layernorm_f32(x, params['ln2_w'][l], params['ln2_b'][l])
        f = h2 @ params['wfc'][l].astype(jnp.float32) + params['bfc'][l]
        f = f * jax.nn.sigmoid(1.702 * f)
        x = x + f @ params['wproj'][l].astype(jnp.float32) + params['bproj'][l]
    return jnp.transpose(x, (1, 0, 2))


if __name__ == "__main__":
    # Small, module-consistent shapes: seq=8, batch=2, width=32, heads=4, layers=2.
    L, N, D, H, LAYERS = 8, 2, 32, 4, 2

    key = jax.random.PRNGKey(0)
    k_x, k_p = jax.random.split(key)
    x = jax.random.normal(k_x, (L, N, D), jnp.float32)        # (seq, batch, width)
    params = init_params(k_p, D, LAYERS, H)

    out = jax.block_until_ready(transformer_forward(x, params, H))

    assert out.shape == (L, N, D)
    assert bool(jnp.all(jnp.isfinite(out)))

    ref = ref_forward(x, params, H)
    max_err = float(jnp.max(jnp.abs(out - ref)))
    assert max_err < 5e-2, f"mismatch vs reference: {max_err}"

    print("KERNEL_OK")
</pallas_src>

<mosaic_0001>
module attributes {stable_mosaic.version = 11 : i64} {
  func.func @transformer_kernel(%arg0: i32, %arg1: i32, %arg2: memref<1x8x32xf32, #tpu.memory_space<vmem>>, %arg3: memref<1x1x32xf32, #tpu.memory_space<vmem>>, %arg4: memref<1x1x32xf32, #tpu.memory_space<vmem>>, %arg5: memref<1x32x32xbf16, #tpu.memory_space<vmem>>, %arg6: memref<1x1x32xf32, #tpu.memory_space<vmem>>, %arg7: memref<1x32x32xbf16, #tpu.memory_space<vmem>>, %arg8: memref<1x1x32xf32, #tpu.memory_space<vmem>>, %arg9: memref<1x32x32xbf16, #tpu.memory_space<vmem>>, %arg10: memref<1x1x32xf32, #tpu.memory_space<vmem>>, %arg11: memref<1x32x32xbf16, #tpu.memory_space<vmem>>, %arg12: memref<1x1x32xf32, #tpu.memory_space<vmem>>, %arg13: memref<1x1x32xf32, #tpu.memory_space<vmem>>, %arg14: memref<1x1x32xf32, #tpu.memory_space<vmem>>, %arg15: memref<1x32x128xbf16, #tpu.memory_space<vmem>>, %arg16: memref<1x1x128xf32, #tpu.memory_space<vmem>>, %arg17: memref<1x128x32xbf16, #tpu.memory_space<vmem>>, %arg18: memref<1x1x32xf32, #tpu.memory_space<vmem>>, %arg19: memref<1x8x32xf32, #tpu.memory_space<vmem>>, %arg20: memref<1x8x32xbf16, #tpu.memory_space<vmem>>) attributes {dimension_semantics = [#tpu.dimension_semantics<parallel>, #tpu.dimension_semantics<arbitrary>], iteration_bounds = array<i64: 2, 2>, scalar_prefetch = 0 : i64, scratch_operands = 1 : i64, tpu.core_type = #tpu.core_type<tc>, window_params = [{transform_indices = @transform_0, window_bounds = array<i64: 1, 8, 32>}, {transform_indices = @transform_1, window_bounds = array<i64: 1, 1, 32>}, {transform_indices = @transform_2, window_bounds = array<i64: 1, 1, 32>}, {transform_indices = @transform_3, window_bounds = array<i64: 1, 32, 32>}, {transform_indices = @transform_4, window_bounds = array<i64: 1, 1, 32>}, {transform_indices = @transform_5, window_bounds = array<i64: 1, 32, 32>}, {transform_indices = @transform_6, window_bounds = array<i64: 1, 1, 32>}, {transform_indices = @transform_7, window_bounds = array<i64: 1, 32, 32>}, {transform_indices = @transform_8, window_bounds = array<i64: 1, 1, 32>}, {transform_indices = @transform_9, window_bounds = array<i64: 1, 32, 32>}, {transform_indices = @transform_10, window_bounds = array<i64: 1, 1, 32>}, {transform_indices = @transform_11, window_bounds = array<i64: 1, 1, 32>}, {transform_indices = @transform_12, window_bounds = array<i64: 1, 1, 32>}, {transform_indices = @transform_13, window_bounds = array<i64: 1, 32, 128>}, {transform_indices = @transform_14, window_bounds = array<i64: 1, 1, 128>}, {transform_indices = @transform_15, window_bounds = array<i64: 1, 128, 32>}, {transform_indices = @transform_16, window_bounds = array<i64: 1, 1, 32>}, {transform_indices = @transform_17, window_bounds = array<i64: 1, 8, 32>}]} {
    %c0_i32 = arith.constant 0 : i32
    %0 = arith.cmpi eq, %arg1, %c0_i32 : i32
    %1 = arith.extui %0 : i1 to i32
    %c0_i32_0 = arith.constant 0 : i32
    %2 = arith.cmpi ne, %1, %c0_i32_0 : i32
    scf.if %2 {
      %c0_104 = arith.constant 0 : index
      %c0_105 = arith.constant 0 : index
      %c0_106 = arith.constant 0 : index
      %202 = vector.load %arg2[%c0_104, %c0_105, %c0_106] : memref<1x8x32xf32, #tpu.memory_space<vmem>>, vector<1x8x32xf32>
      %c0_107 = arith.constant 0 : index
      %c0_108 = arith.constant 0 : index
      %c0_109 = arith.constant 0 : index
      %203 = vector.load %arg19[%c0_107, %c0_108, %c0_109] : memref<1x8x32xf32, #tpu.memory_space<vmem>>, vector<1x8x32xf32>
      tpu.vector_store %arg19[%c0_107, %c0_108, %c0_109], %202 {strides = array<i32>} : memref<1x8x32xf32, #tpu.memory_space<vmem>>, vector<1x8x32xf32>,
    } else {
    }
    %c0 = arith.constant 0 : index
    %c0_1 = arith.constant 0 : index
    %c0_2 = arith.constant 0 : index
    %3 = vector.load %arg19[%c0, %c0_1, %c0_2] : memref<1x8x32xf32, #tpu.memory_space<vmem>>, vector<1x8x32xf32>
    %4 = vector.shape_cast %3 : vector<1x8x32xf32> to vector<8x32xf32>
    %c0_3 = arith.constant 0 : index
    %c0_4 = arith.constant 0 : index
    %c0_5 = arith.constant 0 : index
    %5 = vector.load %arg3[%c0_3, %c0_4, %c0_5] : memref<1x1x32xf32, #tpu.memory_space<vmem>>, vector<1x1x32xf32>
    %6 = vector.shape_cast %5 : vector<1x1x32xf32> to vector<1x32xf32>
    %c0_6 = arith.constant 0 : index
    %c0_7 = arith.constant 0 : index
    %c0_8 = arith.constant 0 : index
    %7 = vector.load %arg4[%c0_6, %c0_7, %c0_8] : memref<1x1x32xf32, #tpu.memory_space<vmem>>, vector<1x1x32xf32>
    %8 = vector.shape_cast %7 : vector<1x1x32xf32> to vector<1x32xf32>
    %cst = arith.constant dense<0.000000e+00> : vector<8xf32>
    %9 = vector.multi_reduction <add>, %4, %cst [1] : vector<8x32xf32> to vector<8xf32>
    %10 = vector.shape_cast %9 : vector<8xf32> to vector<8x1xf32>
    %cst_9 = arith.constant 3.200000e+01 : f32
    %11 = vector.broadcast %cst_9 : f32 to vector<8x1xf32>
    %12 = arith.divf %10, %11 : vector<8x1xf32>
    %13 = vector.broadcast %12 : vector<8x1xf32> to vector<8x32xf32>
    %14 = arith.subf %4, %13 : vector<8x32xf32>
    %15 = arith.mulf %14, %14 : vector<8x32xf32>
    %cst_10 = arith.constant dense<0.000000e+00> : vector<8xf32>
    %16 = vector.multi_reduction <add>, %15, %cst_10 [1] : vector<8x32xf32> to vector<8xf32>
    %17 = vector.shape_cast %16 : vector<8xf32> to vector<8x1xf32>
    %cst_11 = arith.constant 3.200000e+01 : f32
    %18 = vector.broadcast %cst_11 : f32 to vector<8x1xf32>
    %19 = arith.divf %17, %18 : vector<8x1xf32>
    %20 = vector.broadcast %12 : vector<8x1xf32> to vector<8x32xf32>
    %21 = arith.subf %4, %20 : vector<8x32xf32>
    %cst_12 = arith.constant 9.99999974E-6 : f32
    %22 = vector.broadcast %cst_12 : f32 to vector<8x1xf32>
    %23 = arith.addf %19, %22 : vector<8x1xf32>
    %24 = math.rsqrt %23 : vector<8x1xf32>
    %25 = vector.broadcast %24 : vector<8x1xf32> to vector<8x32xf32>
    %26 = arith.mulf %21, %25 : vector<8x32xf32>
    %27 = vector.broadcast %6 : vector<1x32xf32> to vector<8x32xf32>
    %28 = arith.mulf %26, %27 : vector<8x32xf32>
    %29 = vector.broadcast %8 : vector<1x32xf32> to vector<8x32xf32>
    %30 = arith.addf %28, %29 : vector<8x32xf32>
    %31 = arith.truncf %30 : vector<8x32xf32> to vector<8x32xbf16>
    %c0_13 = arith.constant 0 : index
    %c0_14 = arith.constant 0 : index
    %c0_15 = arith.constant 0 : index
    %32 = vector.load %arg5[%c0_13, %c0_14, %c0_15] : memref<1x32x32xbf16, #tpu.memory_space<vmem>>, vector<1x32x32xbf16>
    %33 = vector.shape_cast %32 : vector<1x32x32xbf16> to vector<32x32xbf16>
    %cst_16 = arith.constant dense<0.000000e+00> : vector<8x32xf32>
    %34 = tpu.matmul %31, %33, %cst_16 {dimension_numbers = #tpu.dot_dimension_numbers<[1], [0], [0], [1], [0, 0, 1, 1], [], []>} : vector<8x32xbf16>, vector<32x32xbf16>, vector<8x32xf32> -> vector<8x32xf32>
    %c0_17 = arith.constant 0 : index
    %c0_18 = arith.constant 0 : index
    %c0_19 = arith.constant 0 : index
    %35 = vector.load %arg6[%c0_17, %c0_18, %c0_19] : memref<1x1x32xf32, #tpu.memory_space<vmem>>, vector<1x1x32xf32>
    %36 = vector.shape_cast %35 : vector<1x1x32xf32> to vector<1x32xf32>
    %37 = vector.broadcast %36 : vector<1x32xf32> to vector<8x32xf32>
    %38 = arith.addf %34, %37 : vector<8x32xf32>
    %39 = arith.truncf %38 : vector<8x32xf32> to vector<8x32xbf16>
    %40 = vector.shape_cast %39 : vector<8x32xbf16> to vector<1x8x32xbf16>
    %c0_20 = arith.constant 0 : index
    %c0_21 = arith.constant 0 : index
    %c0_22 = arith.constant 0 : index
    %41 = vector.load %arg7[%c0_20, %c0_21, %c0_22] : memref<1x32x32xbf16, #tpu.memory_space<vmem>>, vector<1x32x32xbf16>
    %42 = vector.shape_cast %41 : vector<1x32x32xbf16> to vector<32x32xbf16>
    %cst_23 = arith.constant dense<0.000000e+00> : vector<8x32xf32>
    %43 = tpu.matmul %31, %42, %cst_23 {dimension_numbers = #tpu.dot_dimension_numbers<[1], [0], [0], [1], [0, 0, 1, 1], [], []>} : vector<8x32xbf16>, vector<32x32xbf16>, vector<8x32xf32> -> vector<8x32xf32>
    %c0_24 = arith.constant 0 : index
    %c0_25 = arith.constant 0 : index
    %c0_26 = arith.constant 0 : index
    %44 = vector.load %arg8[%c0_24, %c0_25, %c0_26] : memref<1x1x32xf32, #tpu.memory_space<vmem>>, vector<1x1x32xf32>
    %45 = vector.shape_cast %44 : vector<1x1x32xf32> to vector<1x32xf32>
    %46 = vector.broadcast %45 : vector<1x32xf32> to vector<8x32xf32>
    %47 = arith.addf %43, %46 : vector<8x32xf32>
    %48 = arith.truncf %47 : vector<8x32xf32> to vector<8x32xbf16>
    %49 = vector.shape_cast %48 : vector<8x32xbf16> to vector<1x8x32xbf16>
    %c0_27 = arith.constant 0 : index
    %c0_28 = arith.constant 0 : index
    %c0_29 = arith.constant 0 : index
    %50 = vector.load %arg9[%c0_27, %c0_28, %c0_29] : memref<1x32x32xbf16, #tpu.memory_space<vmem>>, vector<1x32x32xbf16>
    %51 = vector.shape_cast %50 : vector<1x32x32xbf16> to vector<32x32xbf16>
    %cst_30 = arith.constant dense<0.000000e+00> : vector<8x32xf32>
    %52 = tpu.matmul %31, %51, %cst_30 {dimension_numbers = #tpu.dot_dimension_numbers<[1], [0], [0], [1], [0, 0, 1, 1], [], []>} : vector<8x32xbf16>, vector<32x32xbf16>, vector<8x32xf32> -> vector<8x32xf32>
    %c0_31 = arith.constant 0 : index
    %c0_32 = arith.constant 0 : index
    %c0_33 = arith.constant 0 : index
    %53 = vector.load %arg10[%c0_31, %c0_32, %c0_33] : memref<1x1x32xf32, #tpu.memory_space<vmem>>, vector<1x1x32xf32>
    %54 = vector.shape_cast %53 : vector<1x1x32xf32> to vector<1x32xf32>
    %55 = vector.broadcast %54 : vector<1x32xf32> to vector<8x32xf32>
    %56 = arith.addf %52, %55 : vector<8x32xf32>
    %57 = arith.truncf %56 : vector<8x32xf32> to vector<8x32xbf16>
    %58 = vector.shape_cast %57 : vector<8x32xbf16> to vector<1x8x32xbf16>
    %59 = vector.extract_strided_slice %40 {offsets = [0, 0, 0], sizes = [1, 8, 8], strides = [1, 1, 1]} : vector<1x8x32xbf16> to vector<1x8x8xbf16>
    %60 = vector.extract_strided_slice %49 {offsets = [0, 0, 0], sizes = [1, 8, 8], strides = [1, 1, 1]} : vector<1x8x32xbf16> to vector<1x8x8xbf16>
    "tpu.trace_start"() <{level = 10 : i32, message = "bqd,bkd->bqk"}> : () -> ()
    %cst_34 = arith.constant dense<0.000000e+00> : vector<1x8x8xf32>
    %61 = tpu.matmul %59, %60, %cst_34 {dimension_numbers = #tpu.dot_dimension_numbers<[2], [2], [1], [1], [0, 0, 0, 1, 1, 1], [0], [0]>} : vector<1x8x8xbf16>, vector<1x8x8xbf16>, vector<1x8x8xf32> -> vector<1x8x8xf32>
    "tpu.trace_stop"() : () -> ()
    %cst_35 = arith.constant dense<0xFF800000> : vector<1x8xf32>
    %62 = vector.multi_reduction <maximumf>, %61, %cst_35 [2] : vector<1x8x8xf32> to vector<1x8xf32>
    %63 = vector.shape_cast %62 : vector<1x8xf32> to vector<1x8x1xf32>
    %64 = vector.broadcast %63 : vector<1x8x1xf32> to vector<1x8x8xf32>
    %65 = arith.subf %61, %64 : vector<1x8x8xf32>
    %66 = math.exp %65 : vector<1x8x8xf32>
    %cst_36 = arith.constant dense<0.000000e+00> : vector<1x8xf32>
    %67 = vector.multi_reduction <add>, %66, %cst_36 [2] : vector<1x8x8xf32> to vector<1x8xf32>
    %68 = vector.shape_cast %67 : vector<1x8xf32> to vector<1x8x1xf32>
    %69 = tpu.reciprocal %68 {approx = true} : vector<1x8x1xf32> -> vector<1x8x1xf32>
    %70 = vector.broadcast %69 : vector<1x8x1xf32> to vector<1x8x8xf32>
    %71 = arith.mulf %66, %70 : vector<1x8x8xf32>
    %72 = arith.truncf %71 : vector<1x8x8xf32> to vector<1x8x8xbf16>
    %73 = vector.extract_strided_slice %58 {offsets = [0, 0, 0], sizes = [1, 8, 8], strides = [1, 1, 1]} : vector<1x8x32xbf16> to vector<1x8x8xbf16>
    "tpu.trace_start"() <{level = 10 : i32, message = "bqk,bkd->bqd"}> : () -> ()
    %cst_37 = arith.constant dense<0.000000e+00> : vector<1x8x8xf32>
    %74 = tpu.matmul %72, %73, %cst_37 {dimension_numbers = #tpu.dot_dimension_numbers<[2], [1], [1], [2], [0, 0, 0, 1, 1, 2], [0], [0]>} : vector<1x8x8xbf16>, vector<1x8x8xbf16>, vector<1x8x8xf32> -> vector<1x8x8xf32>
    "tpu.trace_stop"() : () -> ()
    %75 = arith.truncf %74 : vector<1x8x8xf32> to vector<1x8x8xbf16>
    %c0_38 = arith.constant 0 : index
    %c0_39 = arith.constant 0 : index
    %c0_40 = arith.constant 0 : index
    %76 = vector.load %arg20[%c0_38, %c0_39, %c0_40] : memref<1x8x32xbf16, #tpu.memory_space<vmem>>, vector<1x8x8xbf16>
    tpu.vector_store %arg20[%c0_38, %c0_39, %c0_40], %75 {strides = array<i32>} : memref<1x8x32xbf16, #tpu.memory_space<vmem>>, vector<1x8x8xbf16>,
    %77 = vector.extract_strided_slice %40 {offsets = [0, 0, 8], sizes = [1, 8, 8], strides = [1, 1, 1]} : vector<1x8x32xbf16> to vector<1x8x8xbf16>
    %78 = vector.extract_strided_slice %49 {offsets = [0, 0, 8], sizes = [1, 8, 8], strides = [1, 1, 1]} : vector<1x8x32xbf16> to vector<1x8x8xbf16>
    "tpu.trace_start"() <{level = 10 : i32, message = "bqd,bkd->bqk"}> : () -> ()
    %cst_41 = arith.constant dense<0.000000e+00> : vector<1x8x8xf32>
    %79 = tpu.matmul %77, %78, %cst_41 {dimension_numbers = #tpu.dot_dimension_numbers<[2], [2], [1], [1], [0, 0, 0, 1, 1, 1], [0], [0]>} : vector<1x8x8xbf16>, vector<1x8x8xbf16>, vector<1x8x8xf32> -> vector<1x8x8xf32>
    "tpu.trace_stop"() : () -> ()
    %cst_42 = arith.constant dense<0xFF800000> : vector<1x8xf32>
    %80 = vector.multi_reduction <maximumf>, %79, %cst_42 [2] : vector<1x8x8xf32> to vector<1x8xf32>
    %81 = vector.shape_cast %80 : vector<1x8xf32> to vector<1x8x1xf32>
    %82 = vector.broadcast %81 : vector<1x8x1xf32> to vector<1x8x8xf32>
    %83 = arith.subf %79, %82 : vector<1x8x8xf32>
    %84 = math.exp %83 : vector<1x8x8xf32>
    %cst_43 = arith.constant dense<0.000000e+00> : vector<1x8xf32>
    %85 = vector.multi_reduction <add>, %84, %cst_43 [2] : vector<1x8x8xf32> to vector<1x8xf32>
    %86 = vector.shape_cast %85 : vector<1x8xf32> to vector<1x8x1xf32>
    %87 = tpu.reciprocal %86 {approx = true} : vector<1x8x1xf32> -> vector<1x8x1xf32>
    %88 = vector.broadcast %87 : vector<1x8x1xf32> to vector<1x8x8xf32>
    %89 = arith.mulf %84, %88 : vector<1x8x8xf32>
    %90 = arith.truncf %89 : vector<1x8x8xf32> to vector<1x8x8xbf16>
    %91 = vector.extract_strided_slice %58 {offsets = [0, 0, 8], sizes = [1, 8, 8], strides = [1, 1, 1]} : vector<1x8x32xbf16> to vector<1x8x8xbf16>
    "tpu.trace_start"() <{level = 10 : i32, message = "bqk,bkd->bqd"}> : () -> ()
    %cst_44 = arith.constant dense<0.000000e+00> : vector<1x8x8xf32>
    %92 = tpu.matmul %90, %91, %cst_44 {dimension_numbers = #tpu.dot_dimension_numbers<[2], [1], [1], [2], [0, 0, 0, 1, 1, 2], [0], [0]>} : vector<1x8x8xbf16>, vector<1x8x8xbf16>, vector<1x8x8xf32> -> vector<1x8x8xf32>
    "tpu.trace_stop"() : () -> ()
    %93 = arith.truncf %92 : vector<1x8x8xf32> to vector<1x8x8xbf16>
    %c0_45 = arith.constant 0 : index
    %c0_46 = arith.constant 0 : index
    %c8 = arith.constant 8 : index
    %94 = vector.load %arg20[%c0_45, %c0_46, %c8] : memref<1x8x32xbf16, #tpu.memory_space<vmem>>, vector<1x8x8xbf16>
    tpu.vector_store %arg20[%c0_45, %c0_46, %c8], %93 {strides = array<i32>} : memref<1x8x32xbf16, #tpu.memory_space<vmem>>, vector<1x8x8xbf16>,
    %95 = vector.extract_strided_slice %40 {offsets = [0, 0, 16], sizes = [1, 8, 8], strides = [1, 1, 1]} : vector<1x8x32xbf16> to vector<1x8x8xbf16>
    %96 = vector.extract_strided_slice %49 {offsets = [0, 0, 16], sizes = [1, 8, 8], strides = [1, 1, 1]} : vector<1x8x32xbf16> to vector<1x8x8xbf16>
    "tpu.trace_start"() <{level = 10 : i32, message = "bqd,bkd->bqk"}> : () -> ()
    %cst_47 = arith.constant dense<0.000000e+00> : vector<1x8x8xf32>
    %97 = tpu.matmul %95, %96, %cst_47 {dimension_numbers = #tpu.dot_dimension_numbers<[2], [2], [1], [1], [0, 0, 0, 1, 1, 1], [0], [0]>} : vector<1x8x8xbf16>, vector<1x8x8xbf16>, vector<1x8x8xf32> -> vector<1x8x8xf32>
    "tpu.trace_stop"() : () -> ()
    %cst_48 = arith.constant dense<0xFF800000> : vector<1x8xf32>
    %98 = vector.multi_reduction <maximumf>, %97, %cst_48 [2] : vector<1x8x8xf32> to vector<1x8xf32>
    %99 = vector.shape_cast %98 : vector<1x8xf32> to vector<1x8x1xf32>
    %100 = vector.broadcast %99 : vector<1x8x1xf32> to vector<1x8x8xf32>
    %101 = arith.subf %97, %100 : vector<1x8x8xf32>
    %102 = math.exp %101 : vector<1x8x8xf32>
    %cst_49 = arith.constant dense<0.000000e+00> : vector<1x8xf32>
    %103 = vector.multi_reduction <add>, %102, %cst_49 [2] : vector<1x8x8xf32> to vector<1x8xf32>
    %104 = vector.shape_cast %103 : vector<1x8xf32> to vector<1x8x1xf32>
    %105 = tpu.reciprocal %104 {approx = true} : vector<1x8x1xf32> -> vector<1x8x1xf32>
    %106 = vector.broadcast %105 : vector<1x8x1xf32> to vector<1x8x8xf32>
    %107 = arith.mulf %102, %106 : vector<1x8x8xf32>
    %108 = arith.truncf %107 : vector<1x8x8xf32> to vector<1x8x8xbf16>
    %109 = vector.extract_strided_slice %58 {offsets = [0, 0, 16], sizes = [1, 8, 8], strides = [1, 1, 1]} : vector<1x8x32xbf16> to vector<1x8x8xbf16>
    "tpu.trace_start"() <{level = 10 : i32, message = "bqk,bkd->bqd"}> : () -> ()
    %cst_50 = arith.constant dense<0.000000e+00> : vector<1x8x8xf32>
    %110 = tpu.matmul %108, %109, %cst_50 {dimension_numbers = #tpu.dot_dimension_numbers<[2], [1], [1], [2], [0, 0, 0, 1, 1, 2], [0], [0]>} : vector<1x8x8xbf16>, vector<1x8x8xbf16>, vector<1x8x8xf32> -> vector<1x8x8xf32>
    "tpu.trace_stop"() : () -> ()
    %111 = arith.truncf %110 : vector<1x8x8xf32> to vector<1x8x8xbf16>
    %c0_51 = arith.constant 0 : index
    %c0_52 = arith.constant 0 : index
    %c16 = arith.constant 16 : index
    %112 = vector.load %arg20[%c0_51, %c0_52, %c16] : memref<1x8x32xbf16, #tpu.memory_space<vmem>>, vector<1x8x8xbf16>
    tpu.vector_store %arg20[%c0_51, %c0_52, %c16], %111 {strides = array<i32>} : memref<1x8x32xbf16, #tpu.memory_space<vmem>>, vector<1x8x8xbf16>,
    %113 = vector.extract_strided_slice %40 {offsets = [0, 0, 24], sizes = [1, 8, 8], strides = [1, 1, 1]} : vector<1x8x32xbf16> to vector<1x8x8xbf16>
    %114 = vector.extract_strided_slice %49 {offsets = [0, 0, 24], sizes = [1, 8, 8], strides = [1, 1, 1]} : vector<1x8x32xbf16> to vector<1x8x8xbf16>
    "tpu.trace_start"() <{level = 10 : i32, message = "bqd,bkd->bqk"}> : () -> ()
    %cst_53 = arith.constant dense<0.000000e+00> : vector<1x8x8xf32>
    %115 = tpu.matmul %113, %114, %cst_53 {dimension_numbers = #tpu.dot_dimension_numbers<[2], [2], [1], [1], [0, 0, 0, 1, 1, 1], [0], [0]>} : vector<1x8x8xbf16>, vector<1x8x8xbf16>, vector<1x8x8xf32> -> vector<1x8x8xf32>
    "tpu.trace_stop"() : () -> ()
    %cst_54 = arith.constant dense<0xFF800000> : vector<1x8xf32>
    %116 = vector.multi_reduction <maximumf>, %115, %cst_54 [2] : vector<1x8x8xf32> to vector<1x8xf32>
    %117 = vector.shape_cast %116 : vector<1x8xf32> to vector<1x8x1xf32>
    %118 = vector.broadcast %117 : vector<1x8x1xf32> to vector<1x8x8xf32>
    %119 = arith.subf %115, %118 : vector<1x8x8xf32>
    %120 = math.exp %119 : vector<1x8x8xf32>
    %cst_55 = arith.constant dense<0.000000e+00> : vector<1x8xf32>
    %121 = vector.multi_reduction <add>, %120, %cst_55 [2] : vector<1x8x8xf32> to vector<1x8xf32>
    %122 = vector.shape_cast %121 : vector<1x8xf32> to vector<1x8x1xf32>
    %123 = tpu.reciprocal %122 {approx = true} : vector<1x8x1xf32> -> vector<1x8x1xf32>
    %124 = vector.broadcast %123 : vector<1x8x1xf32> to vector<1x8x8xf32>
    %125 = arith.mulf %120, %124 : vector<1x8x8xf32>
    %126 = arith.truncf %125 : vector<1x8x8xf32> to vector<1x8x8xbf16>
    %127 = vector.extract_strided_slice %58 {offsets = [0, 0, 24], sizes = [1, 8, 8], strides = [1, 1, 1]} : vector<1x8x32xbf16> to vector<1x8x8xbf16>
    "tpu.trace_start"() <{level = 10 : i32, message = "bqk,bkd->bqd"}> : () -> ()
    %cst_56 = arith.constant dense<0.000000e+00> : vector<1x8x8xf32>
    %128 = tpu.matmul %126, %127, %cst_56 {dimension_numbers = #tpu.dot_dimension_numbers<[2], [1], [1], [2], [0, 0, 0, 1, 1, 2], [0], [0]>} : vector<1x8x8xbf16>, vector<1x8x8xbf16>, vector<1x8x8xf32> -> vector<1x8x8xf32>
    "tpu.trace_stop"() : () -> ()
    %129 = arith.truncf %128 : vector<1x8x8xf32> to vector<1x8x8xbf16>
    %c0_57 = arith.constant 0 : index
    %c0_58 = arith.constant 0 : index
    %c24 = arith.constant 24 : index
    %130 = vector.load %arg20[%c0_57, %c0_58, %c24] : memref<1x8x32xbf16, #tpu.memory_space<vmem>>, vector<1x8x8xbf16>
    tpu.vector_store %arg20[%c0_57, %c0_58, %c24], %129 {strides = array<i32>} : memref<1x8x32xbf16, #tpu.memory_space<vmem>>, vector<1x8x8xbf16>,
    %c0_59 = arith.constant 0 : index
    %c0_60 = arith.constant 0 : index
    %c0_61 = arith.constant 0 : index
    %131 = vector.load %arg20[%c0_59, %c0_60, %c0_61] : memref<1x8x32xbf16, #tpu.memory_space<vmem>>, vector<1x8x32xbf16>
    %132 = vector.shape_cast %131 : vector<1x8x32xbf16> to vector<8x32xbf16>
    %c0_62 = arith.constant 0 : index
    %c0_63 = arith.constant 0 : index
    %c0_64 = arith.constant 0 : index
    %133 = vector.load %arg11[%c0_62, %c0_63, %c0_64] : memref<1x32x32xbf16, #tpu.memory_space<vmem>>, vector<1x32x32xbf16>
    %134 = vector.shape_cast %133 : vector<1x32x32xbf16> to vector<32x32xbf16>
    %cst_65 = arith.constant dense<0.000000e+00> : vector<8x32xf32>
    %135 = tpu.matmul %132, %134, %cst_65 {dimension_numbers = #tpu.dot_dimension_numbers<[1], [0], [0], [1], [0, 0, 1, 1], [], []>} : vector<8x32xbf16>, vector<32x32xbf16>, vector<8x32xf32> -> vector<8x32xf32>
    %c0_66 = arith.constant 0 : index
    %c0_67 = arith.constant 0 : index
    %c0_68 = arith.constant 0 : index
    %136 = vector.load %arg12[%c0_66, %c0_67, %c0_68] : memref<1x1x32xf32, #tpu.memory_space<vmem>>, vector<1x1x32xf32>
    %137 = vector.shape_cast %136 : vector<1x1x32xf32> to vector<1x32xf32>
    %138 = vector.broadcast %137 : vector<1x32xf32> to vector<8x32xf32>
    %139 = arith.addf %135, %138 : vector<8x32xf32>
    %140 = arith.addf %4, %139 : vector<8x32xf32>
    %141 = vector.shape_cast %140 : vector<8x32xf32> to vector<1x8x32xf32>
    %c0_69 = arith.constant 0 : index
    %c0_70 = arith.constant 0 : index
    %c0_71 = arith.constant 0 : index
    %142 = vector.load %arg19[%c0_69, %c0_70, %c0_71] : memref<1x8x32xf32, #tpu.memory_space<vmem>>, vector<1x8x32xf32>
    tpu.vector_store %arg19[%c0_69, %c0_70, %c0_71], %141 {strides = array<i32>} : memref<1x8x32xf32, #tpu.memory_space<vmem>>, vector<1x8x32xf32>,
    %c0_i32_72 = arith.constant 0 : i32
    %c8_i32 = arith.constant 8 : i32
    %143 = arith.muli %c0_i32_72, %c8_i32 : i32
    %144 = tpu.assume_multiple %143, 8 : i32
    %c0_73 = arith.constant 0 : index
    %145 = arith.index_cast %144 : i32 to index
    %c0_74 = arith.constant 0 : index
    %146 = vector.load %arg19[%c0_73, %145, %c0_74] : memref<1x8x32xf32, #tpu.memory_space<vmem>>, vector<1x8x32xf32>
    %147 = vector.shape_cast %146 : vector<1x8x32xf32> to vector<8x32xf32>
    %c0_75 = arith.constant 0 : index
    %c0_76 = arith.constant 0 : index
    %c0_77 = arith.constant 0 : index
    %148 = vector.load %arg13[%c0_75, %c0_76, %c0_77] : memref<1x1x32xf32, #tpu.memory_space<vmem>>, vector<1x1x32xf32>
    %149 = vector.shape_cast %148 : vector<1x1x32xf32> to vector<1x32xf32>
    %c0_78 = arith.constant 0 : index
    %c0_79 = arith.constant 0 : index
    %c0_80 = arith.constant 0 : index
    %150 = vector.load %arg14[%c0_78, %c0_79, %c0_80] : memref<1x1x32xf32, #tpu.memory_space<vmem>>, vector<1x1x32xf32>
    %151 = vector.shape_cast %150 : vector<1x1x32xf32> to vector<1x32xf32>
    %cst_81 = arith.constant dense<0.000000e+00> : vector<8xf32>
    %152 = vector.multi_reduction <add>, %147, %cst_81 [1] : vector<8x32xf32> to vector<8xf32>
    %153 = vector.shape_cast %152 : vector<8xf32> to vector<8x1xf32>
    %cst_82 = arith.constant 3.200000e+01 : f32
    %154 = vector.broadcast %cst_82 : f32 to vector<8x1xf32>
    %155 = arith.divf %153, %154 : vector<8x1xf32>
    %156 = vector.broadcast %155 : vector<8x1xf32> to vector<8x32xf32>
    %157 = arith.subf %147, %156 : vector<8x32xf32>
    %158 = arith.mulf %157, %157 : vector<8x32xf32>
    %cst_83 = arith.constant dense<0.000000e+00> : vector<8xf32>
    %159 = vector.multi_reduction <add>, %158, %cst_83 [1] : vector<8x32xf32> to vector<8xf32>
    %160 = vector.shape_cast %159 : vector<8xf32> to vector<8x1xf32>
    %cst_84 = arith.constant 3.200000e+01 : f32
    %161 = vector.broadcast %cst_84 : f32 to vector<8x1xf32>
    %162 = arith.divf %160, %161 : vector<8x1xf32>
    %163 = vector.broadcast %155 : vector<8x1xf32> to vector<8x32xf32>
    %164 = arith.subf %147, %163 : vector<8x32xf32>
    %cst_85 = arith.constant 9.99999974E-6 : f32
    %165 = vector.broadcast %cst_85 : f32 to vector<8x1xf32>
    %166 = arith.addf %162, %165 : vector<8x1xf32>
    %167 = math.rsqrt %166 : vector<8x1xf32>
    %168 = vector.broadcast %167 : vector<8x1xf32> to vector<8x32xf32>
    %169 = arith.mulf %164, %168 : vector<8x32xf32>
    %170 = vector.broadcast %149 : vector<1x32xf32> to vector<8x32xf32>
    %171 = arith.mulf %169, %170 : vector<8x32xf32>
    %172 = vector.broadcast %151 : vector<1x32xf32> to vector<8x32xf32>
    %173 = arith.addf %171, %172 : vector<8x32xf32>
    %174 = arith.truncf %173 : vector<8x32xf32> to vector<8x32xbf16>
    %c0_86 = arith.constant 0 : index
    %c0_87 = arith.constant 0 : index
    %c0_88 = arith.constant 0 : index
    %175 = vector.load %arg15[%c0_86, %c0_87, %c0_88] : memref<1x32x128xbf16, #tpu.memory_space<vmem>>, vector<1x32x128xbf16>
    %176 = vector.shape_cast %175 : vector<1x32x128xbf16> to vector<32x128xbf16>
    %cst_89 = arith.constant dense<0.000000e+00> : vector<8x128xf32>
    %177 = tpu.matmul %174, %176, %cst_89 {dimension_numbers = #tpu.dot_dimension_numbers<[1], [0], [0], [1], [0, 0, 1, 1], [], []>} : vector<8x32xbf16>, vector<32x128xbf16>, vector<8x128xf32> -> vector<8x128xf32>
    %c0_90 = arith.constant 0 : index
    %c0_91 = arith.constant 0 : index
    %c0_92 = arith.constant 0 : index
    %178 = vector.load %arg16[%c0_90, %c0_91, %c0_92] : memref<1x1x128xf32, #tpu.memory_space<vmem>>, vector<1x1x128xf32>
    %179 = vector.shape_cast %178 : vector<1x1x128xf32> to vector<1x128xf32>
    %180 = vector.broadcast %179 : vector<1x128xf32> to vector<8x128xf32>
    %181 = arith.addf %177, %180 : vector<8x128xf32>
    %cst_93 = arith.constant 1.702000e+00 : f32
    %182 = vector.broadcast %cst_93 : f32 to vector<8x128xf32>
    %183 = arith.mulf %182, %181 : vector<8x128xf32>
    %184 = arith.negf %183 : vector<8x128xf32>
    %185 = math.exp %184 : vector<8x128xf32>
    %cst_94 = arith.constant 1.000000e+00 : f32
    %186 = vector.broadcast %cst_94 : f32 to vector<8x128xf32>
    %187 = arith.addf %186, %185 : vector<8x128xf32>
    %188 = arith.divf %186, %187 : vector<8x128xf32>
    %189 = arith.mulf %181, %188 : vector<8x128xf32>
    %190 = arith.truncf %189 : vector<8x128xf32> to vector<8x128xbf16>
    %c0_95 = arith.constant 0 : index
    %c0_96 = arith.constant 0 : index
    %c0_97 = arith.constant 0 : index
    %191 = vector.load %arg17[%c0_95, %c0_96, %c0_97] : memref<1x128x32xbf16, #tpu.memory_space<vmem>>, vector<1x128x32xbf16>
    %192 = vector.shape_cast %191 : vector<1x128x32xbf16> to vector<128x32xbf16>
    %cst_98 = arith.constant dense<0.000000e+00> : vector<8x32xf32>
    %193 = tpu.matmul %190, %192, %cst_98 {dimension_numbers = #tpu.dot_dimension_numbers<[1], [0], [0], [1], [0, 0, 1, 1], [], []>} : vector<8x128xbf16>, vector<128x32xbf16>, vector<8x32xf32> -> vector<8x32xf32>
    %c0_99 = arith.constant 0 : index
    %c0_100 = arith.constant 0 : index
    %c0_101 = arith.constant 0 : index
    %194 = vector.load %arg18[%c0_99, %c0_100, %c0_101] : memref<1x1x32xf32, #tpu.memory_space<vmem>>, vector<1x1x32xf32>
    %195 = vector.shape_cast %194 : vector<1x1x32xf32> to vector<1x32xf32>
    %196 = vector.broadcast %195 : vector<1x32xf32> to vector<8x32xf32>
    %197 = arith.addf %193, %196 : vector<8x32xf32>
    %198 = vector.shape_cast %197 : vector<8x32xf32> to vector<1x8x32xf32>
    %199 = arith.addf %146, %198 : vector<1x8x32xf32>
    %c0_102 = arith.constant 0 : index
    %200 = arith.index_cast %144 : i32 to index
    %c0_103 = arith.constant 0 : index
    %201 = vector.load %arg19[%c0_102, %200, %c0_103] : memref<1x8x32xf32, #tpu.memory_space<vmem>>, vector<1x8x32xf32>
    tpu.vector_store %arg19[%c0_102, %200, %c0_103], %199 {strides = array<i32>} : memref<1x8x32xf32, #tpu.memory_space<vmem>>, vector<1x8x32xf32>,
    %c1_i32 = arith.constant 1 : i32
    return
  }
  func.func @transform_0(%arg0: i32, %arg1: i32) -> (i32, i32, i32) {
    %c0_i32 = arith.constant 0 : i32
    %c0_i32_0 = arith.constant 0 : i32
    %c0_i32_1 = arith.constant 0 : i32
    return %arg0, %c0_i32, %c0_i32_0 : i32, i32, i32
  }
  func.func @transform_1(%arg0: i32, %arg1: i32) -> (i32, i32, i32) {
    %c0_i32 = arith.constant 0 : i32
    %c0_i32_0 = arith.constant 0 : i32
    %c0_i32_1 = arith.constant 0 : i32
    return %arg1, %c0_i32, %c0_i32_0 : i32, i32, i32
  }
  func.func @transform_2(%arg0: i32, %arg1: i32) -> (i32, i32, i32) {
    %c0_i32 = arith.constant 0 : i32
    %c0_i32_0 = arith.constant 0 : i32
    %c0_i32_1 = arith.constant 0 : i32
    return %arg1, %c0_i32, %c0_i32_0 : i32, i32, i32
  }
  func.func @transform_3(%arg0: i32, %arg1: i32) -> (i32, i32, i32) {
    %c0_i32 = arith.constant 0 : i32
    %c0_i32_0 = arith.constant 0 : i32
    %c0_i32_1 = arith.constant 0 : i32
    return %arg1, %c0_i32, %c0_i32_0 : i32, i32, i32
  }
  func.func @transform_4(%arg0: i32, %arg1: i32) -> (i32, i32, i32) {
    %c0_i32 = arith.constant 0 : i32
    %c0_i32_0 = arith.constant 0 : i32
    %c0_i32_1 = arith.constant 0 : i32
    return %arg1, %c0_i32, %c0_i32_0 : i32, i32, i32
  }
  func.func @transform_5(%arg0: i32, %arg1: i32) -> (i32, i32, i32) {
    %c0_i32 = arith.constant 0 : i32
    %c0_i32_0 = arith.constant 0 : i32
    %c0_i32_1 = arith.constant 0 : i32
    return %arg1, %c0_i32, %c0_i32_0 : i32, i32, i32
  }
  func.func @transform_6(%arg0: i32, %arg1: i32) -> (i32, i32, i32) {
    %c0_i32 = arith.constant 0 : i32
    %c0_i32_0 = arith.constant 0 : i32
    %c0_i32_1 = arith.constant 0 : i32
    return %arg1, %c0_i32, %c0_i32_0 : i32, i32, i32
  }
  func.func @transform_7(%arg0: i32, %arg1: i32) -> (i32, i32, i32) {
    %c0_i32 = arith.constant 0 : i32
    %c0_i32_0 = arith.constant 0 : i32
    %c0_i32_1 = arith.constant 0 : i32
    return %arg1, %c0_i32, %c0_i32_0 : i32, i32, i32
  }
  func.func @transform_8(%arg0: i32, %arg1: i32) -> (i32, i32, i32) {
    %c0_i32 = arith.constant 0 : i32
    %c0_i32_0 = arith.constant 0 : i32
    %c0_i32_1 = arith.constant 0 : i32
    return %arg1, %c0_i32, %c0_i32_0 : i32, i32, i32
  }
  func.func @transform_9(%arg0: i32, %arg1: i32) -> (i32, i32, i32) {
    %c0_i32 = arith.constant 0 : i32
    %c0_i32_0 = arith.constant 0 : i32
    %c0_i32_1 = arith.constant 0 : i32
    return %arg1, %c0_i32, %c0_i32_0 : i32, i32, i32
  }
  func.func @transform_10(%arg0: i32, %arg1: i32) -> (i32, i32, i32) {
    %c0_i32 = arith.constant 0 : i32
    %c0_i32_0 = arith.constant 0 : i32
    %c0_i32_1 = arith.constant 0 : i32
    return %arg1, %c0_i32, %c0_i32_0 : i32, i32, i32
  }
  func.func @transform_11(%arg0: i32, %arg1: i32) -> (i32, i32, i32) {
    %c0_i32 = arith.constant 0 : i32
    %c0_i32_0 = arith.constant 0 : i32
    %c0_i32_1 = arith.constant 0 : i32
    return %arg1, %c0_i32, %c0_i32_0 : i32, i32, i32
  }
  func.func @transform_12(%arg0: i32, %arg1: i32) -> (i32, i32, i32) {
    %c0_i32 = arith.constant 0 : i32
    %c0_i32_0 = arith.constant 0 : i32
    %c0_i32_1 = arith.constant 0 : i32
    return %arg1, %c0_i32, %c0_i32_0 : i32, i32, i32
  }
  func.func @transform_13(%arg0: i32, %arg1: i32) -> (i32, i32, i32) {
    %c0_i32 = arith.constant 0 : i32
    %c0_i32_0 = arith.constant 0 : i32
    %c0_i32_1 = arith.constant 0 : i32
    return %arg1, %c0_i32, %c0_i32_0 : i32, i32, i32
  }
  func.func @transform_14(%arg0: i32, %arg1: i32) -> (i32, i32, i32) {
    %c0_i32 = arith.constant 0 : i32
    %c0_i32_0 = arith.constant 0 : i32
    %c0_i32_1 = arith.constant 0 : i32
    return %arg1, %c0_i32, %c0_i32_0 : i32, i32, i32
  }
  func.func @transform_15(%arg0: i32, %arg1: i32) -> (i32, i32, i32) {
    %c0_i32 = arith.constant 0 : i32
    %c0_i32_0 = arith.constant 0 : i32
    %c0_i32_1 = arith.constant 0 : i32
    return %arg1, %c0_i32, %c0_i32_0 : i32, i32, i32
  }
  func.func @transform_16(%arg0: i32, %arg1: i32) -> (i32, i32, i32) {
    %c0_i32 = arith.constant 0 : i32
    %c0_i32_0 = arith.constant 0 : i32
    %c0_i32_1 = arith.constant 0 : i32
    return %arg1, %c0_i32, %c0_i32_0 : i32, i32, i32
  }
  func.func @transform_17(%arg0: i32, %arg1: i32) -> (i32, i32, i32) {
    %c0_i32 = arith.constant 0 : i32
    %c0_i32_0 = arith.constant 0 : i32
    %c0_i32_1 = arith.constant 0 : i32
    return %arg0, %c0_i32, %c0_i32_0 : i32, i32, i32
  }
}

</mosaic_0001>

<bundles_post_ra>
// kernel: tpu_custom_call.1
= control target key start
LH: loop header
LB: loop body
LE: loop exit
PB: predicated region body
PF: predicated region fallthrough
CT: control target
= control target key end

     0   :  { %s3295_s0 = inlined_call_operand.hbm [shape: f32[2,8,32], index: 0, kind: input, shape index: {}]   ;;  %s3296_s1 = inlined_call_operand.hbm [shape: f32[2,1,32], index: 1, kind: input, shape index: {}]   ;;  %s3297_s2 = inlined_call_operand.vmem [shape: f32[2,1,32], index: 2, kind: input, shape index: {}]   ;;  %s3298_s3 = inlined_call_operand.vmem [shape: bf16[2,32,32], index: 3, kind: input, shape index: {}]   ;;  %s3299_s4 = inlined_call_operand.vmem [shape: f32[2,1,32], index: 4, kind: input, shape index: {}]   ;;  %s3300_s5 = inlined_call_operand.vmem [shape: bf16[2,32,32], index: 5, kind: input, shape index: {}]   ;;  %s3301_s6 = inlined_call_operand.vmem [shape: f32[2,1,32], index: 6, kind: input, shape index: {}]   ;;  %s3302_s7 = inlined_call_operand.vmem [shape: bf16[2,32,32], index: 7, kind: input, shape index: {}]   ;;  %s3303_s8 = inlined_call_operand.vmem [shape: f32[2,1,32], index: 8, kind: input, shape index: {}]   ;;  %s3304_s9 = inlined_call_operand.vmem [shape: bf16[2,32,32], index: 9, kind: input, shape index: {}]   ;;  %s3305_s10 = inlined_call_operand.vmem [shape: f32[2,1,32], index: 10, kind: input, shape index: {}]   ;;  %s3306_s11 = inlined_call_operand.vmem [shape: f32[2,1,32], index: 11, kind: input, shape index: {}]   ;;  %s3307_s12 = inlined_call_operand.vmem [shape: f32[2,1,32], index: 12, kind: input, shape index: {}]   ;;  %s3308_s13 = inlined_call_operand.vmem [shape: bf16[2,32,128], index: 13, kind: input, shape index: {}]   ;;  %s3309_s14 = inlined_call_operand.vmem [shape: f32[2,1,128], index: 14, kind: input, shape index: {}]   ;;  %s3310_s15 = inlined_call_operand.vmem [shape: bf16[2,128,32], index: 15, kind: input, shape index: {}]   ;;  %s3311_s16 = inlined_call_operand.vmem [shape: f32[2,1,32], index: 16, kind: input, shape index: {}]   ;;  %s3312_s17 = inlined_call_operand.hbm [shape: f32[2,8,32], index: 17, kind: output, shape index: {}]  }
   0x1   :  { %3333 = sst [smem:[#allocation28_spill]] %s3295_s0 }
   0x2   :  { %3334 = sst [smem:[#allocation29_spill]] %s3296_s1 }
   0x3   :  { %3335 = sst [smem:[#allocation30_spill]] %s3298_s3 }
   0x4   :  { %3336 = sst [smem:[#allocation31_spill]] %s3299_s4 }
   0x5   :  { %3337 = sst [smem:[#allocation32_spill]] %s3300_s5 }
   0x6   :  { %3338 = sst [smem:[#allocation33_spill]] %s3301_s6 }
   0x7   :  { %3339 = sst [smem:[#allocation34_spill]] %s3302_s7 }
   0x8   :  { %3340 = sst [smem:[#allocation35_spill]] %s3303_s8 }
   0x9   :  { %3341 = sst [smem:[#allocation36_spill]] %s3304_s9 }
   0xa   :  { %3342 = sst [smem:[#allocation37_spill]] %s3305_s10 }
   0xb   :  { %3343 = sst [smem:[#allocation38_spill]] %s3306_s11 }
   0xc   :  { %3344 = sst [smem:[#allocation39_spill]] %s3307_s12 }
   0xd   :  { %3345 = sst [smem:[#allocation40_spill]] %s3308_s13 }
   0xe   :  { %3346 = sst [smem:[#allocation41_spill]] %s3309_s14 }
   0xf   :  { %3347 = sst [smem:[#allocation42_spill]] %s3310_s15 }
  0x10   :  { %3348 = sst [smem:[#allocation43_spill]] %s3311_s16 }
  0x11   :  { %3349 = sst [smem:[#allocation44_spill]] %s3312_s17 }
  0x12   :  { %22 = vsyncpa [#allocation4], 0 }
  0x13   :  { %24 = vsyncpa [#allocation4 + $0x1], 0 }
  0x14   :  { %25 = vsyncpa [#allocation7], 0 }
  0x15   :  { %27 = vsyncpa [#allocation7 + $0x1], 0 }
  0x16   :  { %28 = vsyncpa [#allocation5], 0 }
  0x17   :  { %30 = vsyncpa [#allocation5 + $0x1], 0  ;;  %s2786_s24 = smov 0   ;;  %s2788_s25 = smov 0  }
  0x18   :  { %s2790_s26 = smov 0   ;;  %s2792_s27 = smov 0  }
  0x19   :  { %s2794_s28 = smov 0   ;;  %s2796_s29 = smov 0  }
  0x1a   :  { %s2798_s0 = smov 0   ;;  %s2800_s30 = smov 0  }
  0x1b   :  { %s2802_s18 = smov 0   ;;  %s2804_s19 = smov 0  }
  0x1c   :  { %s2806_s1 = smov 0  }
  0x1d LB: > { %3350 = sst [smem:[#allocation12_spill]] %s2647_s25  ;;  %s2117_s20 = sadd.s32 4294967295, %s2683_s1   ;;  %s2683_s1 = sphi %s2806_s1, %s36_s1   ;;  %s2679_s19 = sphi %s2804_s19, %s3427_s19   ;;  %s2675_s18 = sphi %s2802_s18, %s3426_s18   ;;  %s2671_s30 = sphi %s2800_s30, %s3425_s30   ;;  %s2667_s0 = sphi %s2798_s0, %s3424_s0   ;;  %s2663_s29 = sphi %s2796_s29, %s3423_s29   ;;  %s2659_s28 = sphi %s2794_s28, %s3422_s28   ;;  %s2655_s27 = sphi %s2792_s27, %s3421_s27   ;;  %s2651_s26 = sphi %s2790_s26, %s3420_s26   ;;  %s2647_s25 = sphi %s2788_s25, %s3419_s25   ;;  %s2643_s24 = sphi %s2786_s24, %s3418_s24  }
  0x1e   : > { %3351 = sst [smem:[#allocation13_spill]] %s2651_s26  ;;  %s2118_s21 = sadd.s32 4294967294, %s2683_s1  }
  0x1f   : > { %3352 = sst [smem:[#allocation14_spill]] %s2655_s27  ;;  %p62_p0 = scmp.ne.s32.totalorder %s2663_s29, %s2659_s28 }
  0x20   : > { %3353 = sst [smem:[#allocation15_spill]] %s2659_s28  ;;  %p3318_p1 = scmp.eq.s32.totalorder %s2683_s1, 0 }
  0x21   : > { %3354 = sst [smem:[#allocation16_spill]] %s2663_s29  ;;  %p68_p2 = scmp.ne.s32.totalorder %s2659_s28, %s2655_s27 }
  0x22   : > { %3355 = sst [smem:[#allocation17_spill]] %s2671_s30  ;;  %p2849_p3 = scmp.eq.s32.totalorder %s2117_s20, 0 }
  0x23   : > { %3356 = sst [smem:[#allocation18_spill]] %s2675_s18  ;;  %p2855_p4 = por %p3318_p1, %p62_p0 }
  0x24   : > { %3357 = sst [smem:[#allocation19_spill]] %s2679_s19  ;;  %p508_p5 = scmp.eq.s32.totalorder %s2117_s20, 3 }
  0x25   : > { %3358 = sst [smem:[#allocation20_spill]] %s2683_s1  ;;  %p2861_p6 = por %p2849_p3, %p68_p2 }
  0x26   : > { %p514_p7 = scmp.eq.s32.totalorder %s2118_s21, 3  ;;  %p2865_p8 = por %p508_p5, %p62_p0 }
  0x27   : > { %p3319_p10 = scmp.lt.s32.totalorder %s2683_s1, 4  ;;  %s534_s15 = sand.u32 1, %s2663_s29  }
  0x28   : > { %s3362_s27 = scalar_select %p2865_p8, 1, 0 }
  0x29   : > { %p2869_p9 = por %p514_p7, %p68_p2  ;;  %s2122_s16 = sshll.u32 %s2679_s19, 7 }
  0x2a   : > { %3363 = sst [smem:[#allocation21_spill]] %s3362_s27  ;;  %s2121_s14 = sshll.u32 %s534_s15, 3 }
  0x2b   : > { %s3364_s30 = scalar_select %p2869_p9, 1, 0 }
  0x2c   : > { %s3366_s12 = sld [smem:[#allocation28_spill]]  ;;  %s538_s10 = scalar_lea.vmem [#allocation3], %s2121_s14 }
  0x2d   : > { %3365 = sst [smem:[#allocation22_spill]] %s3364_s30  ;;  %s545_s9 = sshll.u32 %s538_s10, 4  ;;  %s546_s9 = int_to_ptr.vmem [resolvable:$true] %s545_s9 }
  0x2e   : > { %p2883_p11 = pnand %p3319_p10, %p2855_p4  ;;  %p2124_p12 = scmp.ge.s32.totalorder %s2683_s1, 1 }
  0x2f   : > { %p669_p13 = scmp.lt.s32.totalorder %s2683_s1, 5  ;;  %s535_s30 = scalar_lea.sflag [#allocation4], %s534_s15 }
  0x30   : > { %p2505_p0 = pneg %p2883_p11  ;;  %s2516_s27 = scalar_lea.vmem %s546_s9, 128 }
  0x31   : > { %p2517_p2 = scmp.ne.s32.totalorder %s546_s9, %s2516_s27 }
  0x32   : > { %s543_s11 = scalar_lea.hbm %s3366_s12, %s2122_s16  ;;  %s2685_s12 = smov [#allocation3]  }
  0x33   : > { %p2519_p5 = pnand %p2517_p2, %p2505_p0  ;;  %s2521_s13 = sshll.u32 %s2685_s12, 4  ;;  %s2522_s13 = int_to_ptr.vmem [resolvable:$false] %s2521_s13 }
  0x34   : > { %s2523_s10 = scalar_lea.vmem %s2522_s13, 256  ;;  %p2524_p1 = scmp.lt.s32.totalorder %s546_s9, %s2522_s13 }
  0x35   : > { %p2520_p7 = pneg %p2519_p5  ;;  %p2525_p4 = scmp.lt.s32.totalorder %s2523_s10, %s2516_s27 }
  0x37   : > { %p2526_p10 = por %p2525_p4, %p2524_p1 }
  0x39   : > { %p2527_p9 = pnand %p2526_p10, %p2520_p7 }
  0x3b   : > { %2530 = shalt.err (!%p2527_p9)
}
  0x3c   : > { %2355 = dma.hbm_to_vmem [thread:$0]  (!%p2883_p11), %s543_s11, 128, %s546_s9, %s535_s30  }
  0x3d   : > { %s55_s14 = sadd.s32 1, %s2663_s29  ;;  %p2898_p1 = pnand %p2124_p12, %p669_p13 }
  0x3e   : > { %s45_s16 = sadd.s32 1, %s2675_s18  ;;  %s81_s17 = sadd.s32 1, %s2651_s26 }
  0x3f   : > { %p46_p9 = scmp.ge.s32.totalorder %s45_s16, 2  ;;  %p94_p10 = scmp.ne.s32.totalorder %s2647_s25, %s2643_s24 }
  0x40   : > { %s3370_s27 = sadd.s32 1, %s2679_s19  ;;  %p88_p11 = scmp.ne.s32.totalorder %s2651_s26, %s2647_s25 }
  0x41   : > { %s3429_s16 = smov (%p46_p9, %s45_s16), 0  ;;  %s3431_s27 = smov (!%p46_p9, %s3370_s27), %s2679_s19 }
  0x42   : > { %3369 = sst [smem:[#allocation23_spill]] %s3429_s16  ;;  %s78_s9 = ssub.s32 %s2675_s18, %s3429_s16 }
  0x43   : > { %p50_p0 = scmp.ge.s32.totalorder %s3431_s27, 2  ;;  %p79_p12 = scmp.eq.s32.totalorder %s78_s9, 0 }
  0x44   : > { %p2917_p13 = por %p94_p10, %p2849_p3  ;;  %s552_s30 = sand.u32 1, %s2651_s26  }
  0x45   : > { %s3433_s27 = smov (%p50_p0, %s3431_s27), 0  ;;  %p3374_p2 = scmp.eq.s32.totalorder %s2683_s1, 0 }
  0x46   : > { %3372 = sst [smem:[#allocation24_spill]] %s3433_s27  ;;  %s52_s20 = ssub.s32 %s2679_s19, %s3433_s27 }
  0x47   : > { %s2925_s24 = scalar_select %p79_p12, %s2651_s26, %s81_s17  }
  0x48   : > { %p90_p5 = por %p88_p11, %p3374_p2  ;;  %p53_p7 = scmp.eq.s32.totalorder %s52_s20, 0 }
  0x49   : > { %3373 = sst [smem:[#allocation25_spill]] %s2925_s24  ;;  %s2123_s21 = sshll.u32 %s2675_s18, 4 }
  0x4a   : > { %s555_s12 = scalar_lea.vmem [#allocation6], %s552_s30  ;;  %s3376_s16 = sld [smem:[#allocation29_spill]] }
  0x4b   : > { %s562_s13 = sshll.u32 %s555_s12, 4  ;;  %p3377_p3 = scmp.lt.s32.totalorder %s2683_s1, 4  ;;  %s563_s13 = int_to_ptr.vmem [resolvable:$true] %s562_s13 }
  0x4c   : > { %s2933_s10 = scalar_select %p53_p7, %s2663_s29, %s55_s14  }
  0x4d   : > { %p2940_p4 = pnand %p3377_p3, %p90_p5  ;;  %s553_s17 = scalar_lea.sflag [#allocation7], %s552_s30 }
  0x4e   : > { %3375 = sst [smem:[#allocation26_spill]] %s2933_s10  ;;  %s2544_s20 = scalar_lea.vmem %s563_s13, 16 }
  0x4f   : > { %p2533_p9 = pneg %p2940_p4  ;;  %p2545_p10 = scmp.ne.s32.totalorder %s563_s13, %s2544_s20 }
  0x50   : > { %s560_s8 = scalar_lea.hbm %s3376_s16, %s2123_s21  ;;  %s2686_s14 = smov [#allocation6]  }
  0x51   : > { %p2547_p11 = pnand %p2545_p10, %p2533_p9  ;;  %s2549_s12 = sshll.u32 %s2686_s14, 4  ;;  %s2550_s12 = int_to_ptr.vmem [resolvable:$false] %s2549_s12 }
  0x52   : > { %s2551_s27 = scalar_lea.vmem %s2550_s12, 32  ;;  %p2552_p12 = scmp.lt.s32.totalorder %s563_s13, %s2550_s12 }
  0x53   : > { %p2548_p0 = pneg %p2547_p11  ;;  %p2553_p2 = scmp.lt.s32.totalorder %s2551_s27, %s2544_s20 }
  0x55   : > { %p2554_p7 = por %p2553_p2, %p2552_p12 }
  0x57   : > { %p2555_p8 = pnand %p2554_p7, %p2548_p0 }
  0x59   : > { %2558 = shalt.err (!%p2555_p8)
}
  0x5a   : > { %2358 = dma.hbm_to_vmem [thread:$0]  (!%p2940_p4), %s560_s8, 16, %s563_s13, %s553_s17  }
  0x5b   : > { %673 = sbr.rel (%p2898_p1) target bundleno = 2605 (0xa2d), region = 88 }
  0x60   : > { %s2951_s16 = sand.u32 1, %s2659_s28  }
  0x61   : > { %s3323_s30 = sshll.u32 %s2951_s16, 3  ;;  %s676_s21 = scalar_lea.sflag [#allocation4], %s2951_s16 }
  0x62   : > { %s679_s27 = scalar_lea.vmem [#allocation3], %s3323_s30 }
  0x63   : > { %2630 = dma.done.wait (%p2861_p6), %s676_s21, 128  }
  0x64   : > { %2632 = vsyncadd (%p2861_p6), %s676_s21, 4294967168  ;;  %s684_s7 = sand.u32 1, %s2647_s25  }
  0x65   : > { %s685_s8 = scalar_lea.sflag [#allocation7], %s684_s7  ;;  %s2962_s15 = scalar_lea.vmem [#allocation6], %s684_s7 }
  0x66   : > { %2634 = dma.done.wait (%p2917_p13), %s685_s8, 16  }
  0x67   : > { %2636 = vsyncadd (%p2917_p13), %s685_s8, 4294967280  ;;  %p799_p8 = scmp.lt.s32.totalorder %s2667_s0, 1  ;;  %s3379_s3 = sld [smem:[#allocation30_spill]] }
  0x68   : > { %s3381_s5 = sld [smem:[#allocation32_spill]]  ;;  %s3394_s18 = sshll.u32 %s2951_s16, 3 }
  0x69   : > { %s2970_s13 = scalar_select %p799_p8, %s2667_s0, 1 }
  0x6a   : > { %s3383_s29 = sld [smem:[#allocation34_spill]]  ;;  %p2139_p6 = scmp.ne.s32.totalorder %s2667_s0, 0 }
  0x6b   : > { %s2189_s9 = sshll.u32 %s2970_s13, 4  ;;  %s3385_s7 = sld [smem:[#allocation36_spill]] }
  0x6c   : > { %s3389_s10 = sld [smem:[#allocation39_spill]] }
  0x6d   : > { %s2980_s14 = scalar_lea.vmem %s3379_s3, %s2189_s9  ;;  %s3390_s28 = sld [smem:[#allocation40_spill]] }
  0x6e   : > { %s2989_s22 = scalar_lea.vmem %s3381_s5, %s2189_s9  ;;  %s3391_s21 = sld [smem:[#allocation41_spill]] }
  0x6f   : > { %s3392_s23 = sld [smem:[#allocation43_spill]] }
  0x70   : > { %s2998_s17 = scalar_lea.vmem %s3383_s29, %s2189_s9  ;;  %s3393_s30 = sld [smem:[#allocation42_spill]] }
  0x71   : > { %s3007_s26 = scalar_lea.vmem %s3385_s7, %s2189_s9  ;;  %s3042_s29 = scalar_lea.vmem [#allocation8], %s3394_s18 }
  0x72   : > { %3386 = sst [smem:[#allocation27_spill]] %s3007_s26  ;;  %s839_s4 = scalar_lea.vmem %s3389_s10, %s2970_s13 }
  0x73   : > { %s3024_s20 = scalar_lea.vmem %s3390_s28, %s2189_s9  ;;  %s2194_s26 = sshll.u32 %s2970_s13, 6 }
  0x74   : > { %s847_s24 = scalar_lea.vmem %s3391_s21, %s2970_s13  ;;  %860 = sbr.rel (%p2139_p6) target bundleno = 123 (0x7b), region = 100 }
  0x75   : > { %s855_s25 = scalar_lea.vmem %s3392_s23, %s2970_s13 }
  0x76   : > { %s3038_s1 = scalar_lea.vmem %s3393_s30, %s2194_s26 }
  0x79   : > { %v861_v0 = vld [vmem:[%s679_s27] sm:$0xff]  ;;  %vm862_vm0 = vcmask 261120  }
  0x7a   : > { %863 = vst.msk [vmem:[%s3042_s29] sm:$0xff] %vm862_vm0, %v861_v0 }
  0x7b PF: > { %vm867_vm1 = vcmask 261120   ;;  %v2461_v8 = vld [vmem:[%s2980_s14 + $0x8] sm:$0xff]   ;;  %v2687_v9 = vmov 0.0   ;;  %vm2688_vm2 = vmmov 0   ;;  %v2462_v10 = vld [vmem:[%s2980_s14] sm:$0xff]   ;;  %s3395_s0 = scalar_lea.vmem %s3297_s2, %s2970_s13  ;;  %s3396_s9 = sld [smem:[#allocation33_spill]] }
  0x7c   : > { %2238 = vmatprep.subr.bf16.mxu0 %v2687_v9  ;;  %2242 = vmatprep.mubr.msk.bf16.mxu0 %vm2688_vm2, %v2687_v9  ;;  %v2140_v15 = vld [vmem:[%s2962_s15] ss:$0 sm:$0xff]  ;;  %v2463_v20 = vld [vmem:[%s2989_s22 + $0x8] sm:$0xff]   ;;  %s3398_s10 = sld [smem:[#allocation31_spill]]  ;;  %vm1092_vm3 = vcmask 64512   ;;  %s2689_s28 = smov 112  }
  0x7d   : > { %2239 = vmatpush3.bf16.msra.mxu0 %v2461_v8  ;;  %2262 = vmatprep.subr.bf16.mxu1 %v2687_v9  ;;  %v2141_v17 = vld [vmem:[%s3395_s0] ss:$0 sm:$0xff]  ;;  %v2465_v23 = vld [vmem:[%s2998_s17 + $0x8] sm:$0xff]   ;;  %s2690_s12 = smov 120   ;;  %s3400_s8 = sld [smem:[#allocation35_spill]]  ;;  %vm1154_vm4 = vcmask 1043456  }
  0x7e   : > { %2240 = vmatprep.subr.bf16.mxu0 %v2687_v9  ;;  %2264 = vmatprep.mubr.msk.bf16.mxu1 %vm2688_vm2, %v2687_v9  ;;  %v2464_v22 = vld [vmem:[%s2989_s22] sm:$0xff]   ;;  %s2691_s23 = smov 104   ;;  %vm1199_vm5 = vcmask 60416   ;;  %s3402_s19 = sld [smem:[#allocation27_spill]]  ;;  %vm1321_vm6 = vcmask 126016   ;;  %vm1440_vm7 = vcmask 191616  }
  0x7f   : > { %v2466_v24 = vld [vmem:[%s2998_s17] sm:$0xff]   ;;  %s2692_s11 = smov 8   ;;  %s2693_s30 = smov 16   ;;  %vm1559_vm8 = vcmask 257216  }
  0x80   : > { %s2694_s18 = smov 24   ;;  %s3403_s0 = sld [smem:[#allocation37_spill]] }
  0x81   : > { %v3047_v1 = vld [vmem:[%s3042_s29] sm:$0xff]  ;;  %2241 = vmatpush3.bf16.msra.mxu0 %v2462_v10  ;;  %s3397_s14 = scalar_lea.vmem %s3396_s9, %s2970_s13  ;;  %s3411_s21 = sld [smem:[#allocation21_spill]] }
  0x82   : > { %v868_v2 = vsel %vm867_vm1, %v3047_v1, 0.0  ;;  %2246 = vmatprep.subr.bf16.mxu0 %v2687_v9  ;;  %v2146_v29 = vld [vmem:[%s3397_s14] ss:$0 sm:$0xff]  ;;  %s3399_s3 = scalar_lea.vmem %s3398_s10, %s2970_s13  ;;  %s3405_s14 = sld [smem:[#allocation38_spill]] }
  0x83   : > { %869 = vadd.xlane.f32.xlu0 %v868_v2  ;;  %v2142_v30 = vld [vmem:[%s3399_s3] ss:$0 sm:$0xff]  ;;  %s3401_s5 = scalar_lea.vmem %s3400_s8, %s2970_s13 }
  0x84   : > { %v2150_v39 = vld [vmem:[%s3401_s5] ss:$0 sm:$0xff]  ;;  %s1863_s5 = sshll.u32 %s3042_s29, 4  ;;  %s3233_s5 = int_to_ptr.vmem [resolvable:$true] %s1863_s5 }
  0x86   : > { %s3404_s27 = scalar_lea.vmem %s3403_s0, %s2970_s13 }
  0x87   : > { %p3413_p13 = scmp.ne.s32.totalorder %s3411_s21, 0 }
  0x88   : > { %s3406_s22 = scalar_lea.vmem %s3405_s14, %s2970_s13  ;;  %s2559_s13 = scalar_lea.vmem %s3233_s5, 128 }
  0x89   : > { %p2560_p1 = scmp.ne.s32.totalorder %s3233_s5, %s2559_s13 }
  0x8b   : > { %p2561_p5 = pnand %p2560_p1, %p3413_p13 }
  0x8d   : > { %p2562_p3 = pneg %p2561_p5 }
 0x10c   : > { %v870_v3 = vpop.xlane.xlu0 %869 }
 0x10d   : > { %v872_v4 = vmul.f32 0.03125, %v870_v3 }
 0x10f   : > { %v873_v5 = vsub.f32 %v3047_v1, %v872_v4 }
 0x111   : > { %v874_v6 = vmul.f32 %v873_v5, %v873_v5 }
 0x113   : > { %v875_v7 = vsel %vm867_vm1, %v874_v6, 0.0 }
 0x114   : > { %876 = vadd.xlane.f32.xlu0 %v875_v7 }
 0x19d   : > { %v877_v11 = vpop.xlane.xlu0 %876 }
 0x19e   : > { %v878_v12 = vmul.f32 0.03125, %v877_v11 }
 0x1a0   : > { %v879_v13 = vadd.f32 1e-05, %v878_v12 }
 0x1a2   : > { %2479 = vrsqrt.f32 %v879_v13 }
 0x1af   : > { %v2480_v14 = vpop.eup %2479 }
 0x1b0   : > { %v881_v16 = vmul.f32 %v2480_v14, %v873_v5 }
 0x1b2   : > { %v888_v18 = vmul.f32 %v2140_v15, %v881_v16 }
 0x1b4   : > { %v895_v19 = vadd.f32 %v2141_v17, %v888_v18 }
 0x1b6   : > { %v896_v21 = vpack.c.bf16 %v895_v19, %v895_v19 }
 0x1b8   : > { %2243 = vmatmul.mubr.msk.bf16.vlgmr.msra.gmra.mxu0 %vm867_vm1, %v896_v21 }
 0x1b9   : > { %2247 = vmatpush3.bf16.msra.mxu0 %v2463_v20  ;;  %2250 = vmatprep.mubr.msk.bf16.mxu0 %vm2688_vm2, %v2687_v9 }
 0x1ba   : > { %2248 = vmatprep.subr.bf16.mxu0 %v2687_v9 }
 0x1bd   : > { %2249 = vmatpush3.bf16.msra.mxu0 %v2464_v22 }
 0x1be   : > { %2254 = vmatprep.subr.bf16.mxu0 %v2687_v9 }
 0x1c0   : > { %2251 = vmatmul.mubr.msk.bf16.vlgmr.msra.gmra.mxu0 %vm867_vm1, %v896_v21 }
 0x1c1   : > { %2255 = vmatpush3.bf16.msra.mxu0 %v2465_v23  ;;  %2258 = vmatprep.mubr.msk.bf16.mxu0 %vm2688_vm2, %v2687_v9 }
 0x1c2   : > { %2256 = vmatprep.subr.bf16.mxu0 %v2687_v9 }
 0x1c5   : > { %2257 = vmatpush3.bf16.msra.mxu0 %v2466_v24 }
 0x1c6   : > { %2268 = vmatprep.subr.bf16.mxu0 %v2687_v9 }
 0x1c8   : > { %2259 = vmatmul.mubr.msk.bf16.vlgmr.msra.gmra.mxu0 %vm867_vm1, %v896_v21 }
 0x1c9   : > { %2270 = vmatprep.mubr.msk.bf16.mxu0 %vm2688_vm2, %v2687_v9 }
 0x278   : > { %v957_v25 = vpop.f32.mrf.mxu0 }
 0x279   : > { %v958_v34 = vadd.f32 %v2142_v30, %v957_v25 }
 0x27a   : > { %v2244_v26 = vpop.f32.mrf.mxu0 }
 0x27b   : > { %v963_v40 = vpack.c.bf16 %v958_v34, %v958_v34 }
 0x27c   : > { %v960_v27 = vpop.f32.mrf.mxu0 }
 0x27e   : > { %v2245_v28 = vpop.f32.mrf.mxu0 }
 0x280   : > { %v1021_v31 = vpop.f32.mrf.mxu0 }
 0x281   : > { %v1022_v32 = vadd.f32 %v2146_v29, %v1021_v31 }
 0x282   : > { %v2252_v33 = vpop.f32.mrf.mxu0 }
 0x283   : > { %v1027_v35 = vpack.c.bf16 %v1022_v32, %v1022_v32 }
 0x284   : > { %v1024_v36 = vpop.f32.mrf.mxu0 }
 0x285   : > { %1325 = vrot.lane.b32.xlu0 %v1027_v35, %s2689_s28  ;;  %1205 = vrot.lane.b32.xlu1 %v1027_v35, %s2690_s12  ;;  %v1097_v37 = vsel %vm1092_vm3, %v1027_v35, 0 }
 0x286   : > { %v2253_v38 = vpop.f32.mrf.mxu0  ;;  %2263 = vmatpush3.bf16.xpose.msra.mxu1 %v1097_v37 }
 0x287   : > { %2274 = vmatprep.subr.bf16.mxu1 %v2687_v9 }
 0x288   : > { %v1085_v41 = vpop.f32.mrf.mxu0 }
 0x289   : > { %v1086_v42 = vadd.f32 %v2150_v39, %v1085_v41  ;;  %1202 = vrot.lane.b32.xlu1 %v963_v40, %s2690_s12 }
 0x28a   : > { %v2260_v43 = vpop.f32.mrf.mxu0 }
 0x28b   : > { %v3106_v44 = vpack.c.bf16 %v1086_v42, %v1086_v42 }
 0x28c   : > { %v1088_v45 = vpop.f32.mrf.mxu0 }
 0x28d   : > { %1323 = vrot.lane.b32.xlu1 %v963_v40, %s2689_s28  ;;  %2265 = vmatmul.mubr.msk.bf16.vlgmr.msra.gmra.mxu1 %vm1092_vm3, %v963_v40  ;;  %v1156_v46 = vsel %vm1154_vm4, %v3106_v44, 0 }
 0x28e   : > { %v2261_v47 = vpop.f32.mrf.mxu0  ;;  %2269 = vmatpush3.bf16.msra.mxu0 %v1156_v46  ;;  %2276 = vmatprep.mubr.msk.bf16.mxu1 %vm2688_vm2, %v2687_v9 }
 0x28f   : > { %2280 = vmatprep.subr.bf16.mxu0 %v2687_v9 }
 0x291   : > { %1444 = vrot.lane.b32.xlu1 %v1027_v35, %s2691_s23 }
 0x295   : > { %1442 = vrot.lane.b32.xlu1 %v963_v40, %s2691_s23 }
 0x2f7   : > { %v1206_v48 = vpop.permute.xlu1 %1205  ;;  %v1326_v51 = vpop.permute.xlu0 %1325 }
 0x2f8   : > { %v1211_v49 = vsel %vm1092_vm3, %v1206_v48, 0  ;;  %v1331_v53 = vsel %vm1092_vm3, %v1326_v51, 0 }
 0x2f9   : > { %2275 = vmatpush3.bf16.xpose.msra.mxu1 %v1211_v49 }
 0x2fa   : > { %2286 = vmatprep.subr.bf16.mxu1 %v2687_v9 }
 0x2fb   : > { %v1203_v50 = vpop.permute.xlu1 %1202 }
 0x2ff   : > { %v1324_v52 = vpop.permute.xlu1 %1323 }
 0x300   : > { %2277 = vmatmul.mubr.msk.bf16.vlgmr.msra.gmra.mxu1 %vm1092_vm3, %v1203_v50 }
 0x301   : > { %2287 = vmatpush3.bf16.xpose.msra.mxu1 %v1331_v53  ;;  %2288 = vmatprep.mubr.msk.bf16.mxu1 %vm2688_vm2, %v2687_v9 }
 0x302   : > { %2298 = vmatprep.subr.bf16.mxu1 %v2687_v9 }
 0x303   : > { %v1445_v54 = vpop.permute.xlu1 %1444 }
 0x304   : > { %v1450_v55 = vsel %vm1092_vm3, %v1445_v54, 0 }
 0x307   : > { %v1443_v56 = vpop.permute.xlu1 %1442 }
 0x308   : > { %2289 = vmatmul.mubr.msk.bf16.vlgmr.msra.gmra.mxu1 %vm1092_vm3, %v1324_v52 }
 0x309   : > { %2299 = vmatpush3.bf16.xpose.msra.mxu1 %v1450_v55  ;;  %2300 = vmatprep.mubr.msk.bf16.mxu1 %vm2688_vm2, %v2687_v9 }
 0x30a   : > { %2310 = vmatprep.subr.bf16.mxu1 %v2687_v9 }
 0x310   : > { %2301 = vmatmul.mubr.msk.bf16.vlgmr.msra.gmra.mxu1 %vm1092_vm3, %v1443_v56 }
 0x311   : > { %2314 = vmatprep.mubr.msk.bf16.mxu1 %vm2688_vm2, %v2687_v9 }
 0x34d   : > { %v1133_v57 = vpop.f32.mrf.mxu1 }
 0x34e   : > { %v1139_v58 = vsel %vm1092_vm3, %v1133_v57, -inf }
 0x34f   : > { %1140 = vmax.xlane.f32.xlu1 %v1139_v58  ;;  %v2266_v59 = vpop.f32.mrf.mxu1 }
 0x351   : > { %v1136_v60 = vpop.f32.mrf.mxu1 }
 0x353   : > { %v2267_v61 = vpop.f32.mrf.mxu1 }
 0x3c0   : > { %v1247_v62 = vpop.f32.mrf.mxu1 }
 0x3c1   : > { %v1253_v63 = vsel %vm1092_vm3, %v1247_v62, -inf }
 0x3c2   : > { %1254 = vmax.xlane.f32.xlu0 %v1253_v63  ;;  %v2278_v0 = vpop.f32.mrf.mxu1 }
 0x3c4   : > { %v1250_v2 = vpop.f32.mrf.mxu1 }
 0x3c6   : > { %v2279_v3 = vpop.f32.mrf.mxu1 }
 0x3c8   : > { %v1367_v4 = vpop.f32.mrf.mxu1 }
 0x3c9   : > { %v1373_v5 = vsel %vm1092_vm3, %v1367_v4, -inf }
 0x3ca   : > { %1374 = vmax.xlane.f32.xlu1 %v1373_v5  ;;  %v2290_v6 = vpop.f32.mrf.mxu1 }
 0x3cc   : > { %v1370_v7 = vpop.f32.mrf.mxu1 }
 0x3ce   : > { %v2291_v8 = vpop.f32.mrf.mxu1 }
 0x3d0   : > { %v1486_v10 = vpop.f32.mrf.mxu1 }
 0x3d1   : > { %v1492_v11 = vsel %vm1092_vm3, %v1486_v10, -inf }
 0x3d2   : > { %1493 = vmax.xlane.f32.xlu1 %v1492_v11  ;;  %v2302_v12 = vpop.f32.mrf.mxu1  ;;  %v2468_v11 = vld [vmem:[%s3402_s19] sm:$0xff]  }
 0x3d4   : > { %v1489_v13 = vpop.f32.mrf.mxu1 }
 0x3d6   : > { %v2303_v14 = vpop.f32.mrf.mxu1 }
 0x3d8   : > { %v1141_v15 = vpop.xlane.xlu1 %1140 }
 0x3d9   : > { %v1142_v16 = vsub.f32 %v1133_v57, %v1141_v15 }
 0x3db   : > { %v1143_v17 = vmul.f32 1.442695, %v1142_v16 }
 0x3dd   : > { %2481 = vpow2.f32 %v1143_v17 }
 0x3ea   : > { %v2482_v18 = vpop.eup %2481 }
 0x3eb   : > { %v1145_v19 = vsel %vm1092_vm3, %v2482_v18, 0.0 }
 0x3ec   : > { %1146 = vadd.xlane.f32.xlu0 %v1145_v19 }
 0x44b   : > { %v1255_v20 = vpop.xlane.xlu0 %1254 }
 0x44c   : > { %v1256_v21 = vsub.f32 %v1247_v62, %v1255_v20 }
 0x44e   : > { %v1257_v22 = vmul.f32 1.442695, %v1256_v21  ;;  %v2165_v21 = vld [vmem:[%s3404_s27] ss:$0 sm:$0xff] }
 0x450   : > { %2483 = vpow2.f32 %v1257_v22 }
 0x453   : > { %v1375_v23 = vpop.xlane.xlu1 %1374 }
 0x454   : > { %v1376_v24 = vsub.f32 %v1367_v4, %v1375_v23 }
 0x456   : > { %v1377_v25 = vmul.f32 1.442695, %v1376_v24 }
 0x458   : > { %2485 = vpow2.f32 %v1377_v25 }
 0x45b   : > { %v1494_v31 = vpop.xlane.xlu1 %1493 }
 0x45c   : > { %v1495_v32 = vsub.f32 %v1486_v10, %v1494_v31  ;;  %v2467_v10 = vld [vmem:[%s3402_s19 + $0x8] sm:$0xff]  }
 0x45d   : > { %v2484_v26 = vpop.eup %2483  ;;  %2311 = vmatpush3.bf16.msra.mxu1 %v2467_v10 }
 0x45e   : > { %v1259_v27 = vsel %vm1092_vm3, %v2484_v26, 0.0  ;;  %v1496_v33 = vmul.f32 1.442695, %v1495_v32  ;;  %2312 = vmatprep.subr.bf16.mxu1 %v2687_v9 }
 0x45f   : > { %1260 = vadd.xlane.f32.xlu1 %v1259_v27 }
 0x461   : > { %2313 = vmatpush3.bf16.msra.mxu1 %v2468_v11 }
 0x462   : > { %2326 = vmatprep.subr.bf16.mxu1 %v2687_v9 }
 0x465   : > { %v2486_v28 = vpop.eup %2485 }
 0x466   : > { %v1379_v29 = vsel %vm1092_vm3, %v2486_v28, 0.0 }
 0x467   : > { %1380 = vadd.xlane.f32.xlu0 %v1379_v29 }
 0x470   : > { %1385 = vrot.lane.b32.xlu1 %v3106_v44, %s2689_s28 }
 0x475   : > { %v1147_v30 = vpop.xlane.xlu0 %1146 }
 0x476   : > { %2487 = vrcp.f32 %v1147_v30 }
 0x477   : > { %2489 = vpow2.f32 %v1496_v33 }
 0x47d   : > { %1266 = vrot.lane.b32.xlu0 %v3106_v44, %s2690_s12  ;;  %s3409_s12 = sld [smem:[#allocation17_spill]] }
 0x483   : > { %v2488_v34 = vpop.eup %2487  ;;  %s2186_s8 = sshll.u32 %s3409_s12, 7 }
 0x484   : > { %v1149_v35 = vmul.f32 %v2488_v34, %v2482_v18  ;;  %v2490_v37 = vpop.eup %2489 }
 0x485   : > { %v1498_v38 = vsel %vm1092_vm3, %v2490_v37, 0.0 }
 0x486   : > { %v1150_v36 = vpack.c.bf16 %v1149_v35, %v1149_v35  ;;  %v2470_v35 = vld [vmem:[%s3024_s20] sm:$0xff]  }
 0x488   : > { %2271 = vmatmul.mubr.msk.bf16.vlgmr.msra.gmra.mxu0 %vm1092_vm3, %v1150_v36 }
 0x489   : > { %2282 = vmatprep.mubr.msk.bf16.mxu0 %vm2688_vm2, %v2687_v9 }
 0x494   : > { %1499 = vadd.xlane.f32.xlu1 %v1498_v38 }
 0x4a5   : > { %1504 = vrot.lane.b32.xlu1 %v3106_v44, %s2691_s23 }
 0x4e8   : > { %v1261_v39 = vpop.xlane.xlu1 %1260 }
 0x4e9   : > { %2491 = vrcp.f32 %v1261_v39 }
 0x4ec   : > { %v1386_v46 = vpop.permute.xlu1 %1385 }
 0x4ed   : > { %v1391_v48 = vsel %vm1154_vm4, %v1386_v46, 0 }
 0x4f0   : > { %v1381_v40 = vpop.xlane.xlu0 %1380 }
 0x4f1   : > { %2493 = vrcp.f32 %v1381_v40  ;;  %v2169_v40 = vld [vmem:[%s3406_s22] ss:$0 sm:$0xff] }
 0x4f4   : > { %v1267_v41 = vpop.permute.xlu0 %1266 }
 0x4f5   : > { %v1272_v42 = vsel %vm1154_vm4, %v1267_v41, 0 }
 0x4f6   : > { %v2492_v43 = vpop.eup %2491  ;;  %2281 = vmatpush3.bf16.msra.mxu0 %v1272_v42  ;;  %v2170_v42 = vld [vmem:[%s839_s4] ss:$0 sm:$0xff] }
 0x4f7   : > { %2292 = vmatprep.subr.bf16.mxu0 %v2687_v9  ;;  %v1263_v45 = vmul.f32 %v2492_v43, %v2484_v26 }
 0x4f9   : > { %v1264_v47 = vpack.c.bf16 %v1263_v45, %v1263_v45 }
 0x4fb   : > { %2283 = vmatmul.mubr.msk.bf16.vlgmr.msra.gmra.mxu0 %vm1092_vm3, %v1264_v47  ;;  %v2471_v47 = vld [vmem:[%s3038_s1 + $0x38] sm:$0xff]  }
 0x4fc   : > { %2293 = vmatpush3.bf16.msra.mxu0 %v1391_v48  ;;  %2294 = vmatprep.mubr.msk.bf16.mxu0 %vm2688_vm2, %v2687_v9  ;;  %v2472_v48 = vld [vmem:[%s3038_s1 + $0x30] sm:$0xff]  }
 0x4fd   : > { %2304 = vmatprep.subr.bf16.mxu0 %v2687_v9 }
 0x4fe   : > { %v2494_v44 = vpop.eup %2493 }
 0x4ff   : > { %v1383_v49 = vmul.f32 %v2494_v44, %v2486_v28  ;;  %v2473_v44 = vld [vmem:[%s3038_s1 + $0x28] sm:$0xff]  }
 0x501   : > { %v1384_v50 = vpack.c.bf16 %v1383_v49, %v1383_v49  ;;  %v2474_v49 = vld [vmem:[%s3038_s1 + $0x20] sm:$0xff]  }
 0x503   : > { %2295 = vmatmul.mubr.msk.bf16.vlgmr.msra.gmra.mxu0 %vm1092_vm3, %v1384_v50  ;;  %v2475_v50 = vld [vmem:[%s3038_s1 + $0x18] sm:$0xff]  }
 0x504   : > { %2306 = vmatprep.mubr.msk.bf16.mxu0 %vm2688_vm2, %v2687_v9 }
 0x51d   : > { %v1500_v51 = vpop.xlane.xlu1 %1499 }
 0x51e   : > { %2495 = vrcp.f32 %v1500_v51  ;;  %v2476_v51 = vld [vmem:[%s3038_s1 + $0x10] sm:$0xff]  }
 0x521   : > { %v1505_v52 = vpop.permute.xlu1 %1504 }
 0x522   : > { %v1510_v53 = vsel %vm1154_vm4, %v1505_v52, 0  ;;  %v2477_v52 = vld [vmem:[%s3038_s1 + $0x8] sm:$0xff]  }
 0x523   : > { %2305 = vmatpush3.bf16.msra.mxu0 %v1510_v53  ;;  %v2478_v53 = vld [vmem:[%s3038_s1] sm:$0xff]  }
 0x524   : > { %2318 = vmatprep.subr.bf16.mxu0 %v2687_v9 }
 0x52b   : > { %v2496_v54 = vpop.eup %2495 }
 0x52c   : > { %v1502_v55 = vmul.f32 %v2496_v54, %v2490_v37  ;;  %v2171_v54 = vld [vmem:[%s847_s24] ss:$0 sm:$0xff] }
 0x52e   : > { %v1503_v56 = vpack.c.bf16 %v1502_v55, %v1502_v55 }
 0x530   : > { %2307 = vmatmul.mubr.msk.bf16.vlgmr.msra.gmra.mxu0 %vm1092_vm3, %v1503_v56 }
 0x531   : > { %2322 = vmatprep.mubr.msk.bf16.mxu0 %vm2688_vm2, %v2687_v9 }
 0x548   : > { %v1192_v57 = vpop.f32.mrf.mxu0 }
 0x549   : > { %v1198_v58 = vpack.c.bf16 %v1192_v57, %v1192_v57 }
 0x54a   : > { %v2272_v59 = vpop.f32.mrf.mxu0 }
 0x54b   : > { %1200 = vst.msk [vmem:[#allocation2] sm:$0xf] %vm1199_vm5, %v1198_v58 }
 0x54c   : > { %v1195_v60 = vpop.f32.mrf.mxu0 }
 0x54e   : > { %v2273_v61 = vpop.f32.mrf.mxu0 }
 0x5bb   : > { %v1308_v62 = vpop.f32.mrf.mxu0 }
 0x5bc   : > { %v2195_v63 = vpack.c.bf16 %v1308_v62, %v1308_v62 }
 0x5bd   : > { %v2284_v0 = vpop.f32.mrf.mxu0 }
 0x5be   : > { %1318 = vrot.lane.b32.xlu0 %v2195_v63, %s2692_s11  ;;  %s3412_s11 = sld [smem:[#allocation44_spill]] }
 0x5bf   : > { %v1311_v2 = vpop.f32.mrf.mxu0 }
 0x5c1   : > { %v2285_v3 = vpop.f32.mrf.mxu0 }
 0x5c2   : > { %v2176_v3 = vld [vmem:[%s855_s25] ss:$0 sm:$0xff]  ;;  %s1850_s25 = scalar_lea.sflag [#allocation5], %s2951_s16 }
 0x5c3   : > { %v1427_v4 = vpop.f32.mrf.mxu0 }
 0x5c4   : > { %v2196_v5 = vpack.c.bf16 %v1427_v4, %v1427_v4 }
 0x5c5   : > { %v2296_v6 = vpop.f32.mrf.mxu0 }
 0x5c6   : > { %1437 = vrot.lane.b32.xlu1 %v2196_v5, %s2693_s30  ;;  %s3231_s30 = scalar_lea.hbm %s3412_s11, %s2186_s8 }
 0x5c7   : > { %v1430_v7 = vpop.f32.mrf.mxu0 }
 0x5c9   : > { %v2297_v8 = vpop.f32.mrf.mxu0 }
 0x5f0   : > { %v1546_v12 = vpop.f32.mrf.mxu0 }
 0x5f1   : > { %v2197_v13 = vpack.c.bf16 %v1546_v12, %v1546_v12 }
 0x5f2   : > { %v2308_v14 = vpop.f32.mrf.mxu0 }
 0x5f3   : > { %1556 = vrot.lane.b32.xlu0 %v2197_v13, %s2694_s18  ;;  %s2695_s18 = smov [#allocation8]  }
 0x5f4   : > { %v1549_v15 = vpop.f32.mrf.mxu0  ;;  %s2563_s6 = sshll.u32 %s2695_s18, 4  ;;  %s2564_s6 = int_to_ptr.vmem [resolvable:$false] %s2563_s6 }
 0x5f5   : > { %s2565_s26 = scalar_lea.vmem %s2564_s6, 256  ;;  %p2566_p4 = scmp.lt.s32.totalorder %s3233_s5, %s2564_s6 }
 0x5f6   : > { %v2309_v16 = vpop.f32.mrf.mxu0  ;;  %p2567_p9 = scmp.lt.s32.totalorder %s2565_s26, %s2559_s13 }
 0x5f8   : > { %p2568_p10 = por %p2567_p9, %p2566_p4 }
 0x5fa   : > { %p2569_p11 = pnand %p2568_p10, %p2562_p3 }
 0x630   : > { %v1319_v17 = vpop.permute.xlu0 %1318 }
 0x631   : > { %1322 = vst.msk [vmem:[#allocation2] sm:$0xf] %vm1321_vm6, %v1319_v17 }
 0x638   : > { %v1438_v18 = vpop.permute.xlu1 %1437 }
 0x639   : > { %1441 = vst.msk [vmem:[#allocation2] sm:$0xf] %vm1440_vm7, %v1438_v18 }
 0x665   : > { %v1557_v19 = vpop.permute.xlu0 %1556 }
 0x666   : > { %1560 = vst.msk [vmem:[#allocation2] sm:$0xf] %vm1559_vm8, %v1557_v19 }
 0x66d   : > { %v1561_v20 = vld [vmem:[#allocation2] sm:$0xf] }
 0x66e   : > { %2315 = vmatmul.mubr.msk.bf16.vlgmr.msra.gmra.mxu1 %vm867_vm1, %v1561_v20 }
 0x66f   : > { %2342 = vmatprep.mubr.msk.bf16.mxu1 %vm2688_vm2, %v2687_v9  ;;  %2327 = vmatpush3.bf16.msra.mxu1 %v2471_v47 }
 0x670   : > { %2328 = vmatprep.subr.bf16.mxu1 %v2687_v9 }
 0x673   : > { %2329 = vmatpush3.bf16.msra.mxu1 %v2472_v48 }
 0x674   : > { %2330 = vmatprep.subr.bf16.mxu1 %v2687_v9 }
 0x677   : > { %2331 = vmatpush3.bf16.msra.mxu1 %v2473_v44 }
 0x678   : > { %2332 = vmatprep.subr.bf16.mxu1 %v2687_v9 }
 0x67b   : > { %2333 = vmatpush3.bf16.msra.mxu1 %v2474_v49 }
 0x67c   : > { %2334 = vmatprep.subr.bf16.mxu1 %v2687_v9 }
 0x67f   : > { %2335 = vmatpush3.bf16.msra.mxu1 %v2475_v50 }
 0x680   : > { %2336 = vmatprep.subr.bf16.mxu1 %v2687_v9 }
 0x683   : > { %2337 = vmatpush3.bf16.msra.mxu1 %v2476_v51 }
 0x684   : > { %2338 = vmatprep.subr.bf16.mxu1 %v2687_v9 }
 0x687   : > { %2339 = vmatpush3.bf16.msra.mxu1 %v2477_v52 }
 0x688   : > { %2340 = vmatprep.subr.bf16.mxu1 %v2687_v9 }
 0x68b   : > { %2341 = vmatpush3.bf16.msra.mxu1 %v2478_v53 }
 0x72e   : > { %v1622_v22 = vpop.f32.mrf.mxu1 }
 0x72f   : > { %v1623_v23 = vadd.f32 %v2165_v21, %v1622_v22 }
 0x730   : > { %v2316_v24 = vpop.f32.mrf.mxu1 }
 0x731   : > { %v1628_v25 = vadd.f32 %v1623_v23, %v3047_v1  ;;  %v2469_v1 = vld [vmem:[%s3024_s20 + $0x8] sm:$0xff]  }
 0x732   : > { %v1625_v26 = vpop.f32.mrf.mxu1  ;;  %2319 = vmatpush3.bf16.msra.mxu0 %v2469_v1 }
 0x733   : > { %1629 = vst.msk [vmem:[%s3042_s29] sm:$0xff] %vm867_vm1, %v1628_v25  ;;  %2320 = vmatprep.subr.bf16.mxu0 %v2687_v9 }
 0x734   : > { %v2317_v27 = vpop.f32.mrf.mxu1 }
 0x736   : > { %2321 = vmatpush3.bf16.msra.mxu0 %v2470_v35 }
 0x73a   : > { %v3180_v28 = vld [vmem:[%s3042_s29] sm:$0xff] }
 0x73b   : > { %v1633_v29 = vsel %vm867_vm1, %v3180_v28, 0.0 }
 0x73c   : > { %1634 = vadd.xlane.f32.xlu1 %v1633_v29 }
 0x7c5   : > { %v1635_v30 = vpop.xlane.xlu1 %1634 }
 0x7c6   : > { %v1636_v31 = vmul.f32 0.03125, %v1635_v30 }
 0x7c8   : > { %v1637_v32 = vsub.f32 %v3180_v28, %v1636_v31 }
 0x7ca   : > { %v1638_v33 = vmul.f32 %v1637_v32, %v1637_v32 }
 0x7cc   : > { %v1639_v34 = vsel %vm867_vm1, %v1638_v33, 0.0 }
 0x7cd   : > { %1640 = vadd.xlane.f32.xlu0 %v1639_v34 }
 0x856   : > { %v1641_v36 = vpop.xlane.xlu0 %1640 }
 0x857   : > { %v1642_v37 = vmul.f32 0.03125, %v1641_v36 }
 0x859   : > { %v1643_v38 = vadd.f32 1e-05, %v1642_v37 }
 0x85b   : > { %2497 = vrsqrt.f32 %v1643_v38 }
 0x868   : > { %v2498_v39 = vpop.eup %2497 }
 0x869   : > { %v1645_v41 = vmul.f32 %v2498_v39, %v1637_v32 }
 0x86b   : > { %v1652_v43 = vmul.f32 %v2169_v40, %v1645_v41 }
 0x86d   : > { %v1659_v45 = vadd.f32 %v2170_v42, %v1652_v43 }
 0x86f   : > { %v1660_v46 = vpack.c.bf16 %v1659_v45, %v1659_v45 }
 0x871   : > { %2323 = vmatmul.mubr.msk.bf16.vlgmr.msra.gmra.mxu0 %vm867_vm1, %v1660_v46 }
 0x931   : > { %v1721_v55 = vpop.f32.mrf.mxu0 }
 0x932   : > { %v1722_v56 = vadd.f32 %v2171_v54, %v1721_v55 }
 0x933   : > { %v2324_v57 = vpop.f32.mrf.mxu0 }
 0x934   : > { %v2175_v58 = vmul.f32 -1.702, %v1722_v56 }
 0x935   : > { %v1724_v59 = vpop.f32.mrf.mxu0 }
 0x936   : > { %v1729_v60 = vmul.f32 1.442695, %v2175_v58 }
 0x937   : > { %v2325_v61 = vpop.f32.mrf.mxu0 }
 0x938   : > { %2499 = vpow2.f32 %v1729_v60 }
 0x945   : > { %v2500_v62 = vpop.eup %2499 }
 0x946   : > { %v1731_v9 = vadd.f32 1.0, %v2500_v62 }
 0x948   : > { %2501 = vrcp.f32 %v1731_v9 }
 0x955   : > { %v2502_v63 = vpop.eup %2501 }
 0x956   : > { %v1734_v0 = vmul.f32 %v2502_v63, %v1722_v56 }
 0x958   : > { %v1735_v2 = vpack.c.bf16 %v1734_v0, %v1734_v0 }
 0x95a   : > { %2343 = vmatmul.mubr.bf16.vlgmr.msra.gmra.mxu1 %v1735_v2 }
 0xa1a   : > { %v1841_v4 = vpop.f32.mrf.mxu1 }
 0xa1b   : > { %v1842_v5 = vadd.f32 %v2176_v3, %v1841_v4 }
 0xa1c   : > { %v2344_v6 = vpop.f32.mrf.mxu1 }
 0xa1d   : > { %v1847_v7 = vadd.f32 %v1842_v5, %v3180_v28 }
 0xa1e   : > { %v1844_v8 = vpop.f32.mrf.mxu1 }
 0xa1f   : > { %1848 = vst.msk [vmem:[%s3042_s29] sm:$0xff] %vm867_vm1, %v1847_v7 }
 0xa20   : > { %v2345_v10 = vpop.f32.mrf.mxu1 }
 0xa21   : > { %2572 = shalt.err (!%p2569_p11)
}
 0xa22   : > { %s2573_s29 = scalar_lea.hbm %s3231_s30, 128  ;;  %s2577_s27 = scalar_lea.hbm %s3412_s11, 256 }
 0xa23   : > { %p2574_p0 = scmp.ne.s32.totalorder %s3231_s30, %s2573_s29  ;;  %p2578_p7 = scmp.lt.s32.totalorder %s3231_s30, %s3412_s11 }
 0xa24   : > { %p2579_p8 = scmp.lt.s32.totalorder %s2577_s27, %s2573_s29 }
 0xa25   : > { %p2575_p12 = pnand %p2574_p0, %p3413_p13 }
 0xa26   : > { %p2580_p6 = por %p2579_p8, %p2578_p7 }
 0xa27   : > { %p2576_p2 = pneg %p2575_p12 }
 0xa29   : > { %p2581_p1 = pnand %p2580_p6, %p2576_p2 }
 0xa2b   : > { %2584 = shalt.err (!%p2581_p1)
}
 0xa2c   : > { %2350 = dma.vmem_to_hbm [thread:$0]  (%p3413_p13), %s3233_s5, 128, %s3231_s30, %s1850_s25  }
 0xa2d PF: > { %s3414_s14 = sld [smem:[#allocation20_spill]] }
 0xa2e   : > { %s3415_s22 = sld [smem:[#allocation14_spill]] }
 0xa2f   : > { %s3416_s17 = sld [smem:[#allocation22_spill]] }
 0xa33   : > { %p2364_p5 = scmp.ge.s32.totalorder %s3414_s14, 2 }
 0xa34   : > { %s1875_s10 = sand.u32 1, %s3415_s22  }
 0xa35   : > { %p3417_p3 = scmp.ne.s32.totalorder %s3416_s17, 0  ;;  %s1876_s20 = scalar_lea.sflag [#allocation5], %s1875_s10 }
 0xa37   : > { %p2360_p4 = pnand %p2364_p5, %p3417_p3 }
 0xa39   : > { %p2361_p9 = pneg %p2360_p4 }
 0xa3b   : > { %2638 = dma.done.wait (%p2361_p9), %s1876_s20, 128  }
 0xa3c   : > { %2640 = vsyncadd (%p2361_p9), %s1876_s20, 4294967168  ;;  %s36_s1 = sadd.s32 1, %s3414_s14   ;;  %s3418_s24 = sld [smem:[#allocation12_spill]] }
 0xa3d   : > { %p33_p10 = scmp.ge.s32.totalorder %s36_s1, 6   ;;  %s3419_s25 = sld [smem:[#allocation13_spill]] }
 0xa3e   : > { %s3420_s26 = sld [smem:[#allocation25_spill]] }
 0xa3f   : > { %s3421_s27 = sld [smem:[#allocation15_spill]] }
 0xa40   : > { %s3422_s28 = sld [smem:[#allocation16_spill]] }
 0xa41   : > { %s3423_s29 = sld [smem:[#allocation26_spill]]  ;;  %35 = sbr.rel (!%p33_p10) target bundleno = 29 (0x1d), region = 195 }
 0xa42   : > { %s3424_s0 = sld [smem:[#allocation18_spill]] }
 0xa43   : > { %s3425_s30 = sld [smem:[#allocation19_spill]] }
 0xa44   : > { %s3426_s18 = sld [smem:[#allocation23_spill]] }
 0xa45   : > { %s3427_s19 = sld [smem:[#allocation24_spill]] }
 0xa46   :  { %1881 = vsyncpa [#allocation4], 1 }
 0xa47   :  { %1883 = vsyncpa [#allocation4 + $0x1], 1 }
 0xa48   :  { %1884 = vsyncpa [#allocation7], 1 }
 0xa49   :  { %1886 = vsyncpa [#allocation7 + $0x1], 1 }
 0xa4a   :  { %1887 = vsyncpa [#allocation5], 1 }
 0xa4b   :  { %1889 = vsyncpa [#allocation5 + $0x1], 1 }

</bundles_post_ra>
